<compile_context>
chip_gen: v7x
topology: tpu7x:2x2x1
jax: 0.10.0
libtpu: 0.0.40
codegen_flags: <defaults>
</compile_context>

<pallas_src>
import jax
import jax.numpy as jnp
import numpy as np
from jax import lax
from jax.experimental import pallas as pl
from jax.experimental.pallas import tpu as pltpu

# ----------------------------- configuration --------------------------------
N_POINTS = 256          # number of points
TN = 256                # tile size along the points (lane) axis; multiple of 128
D_PT = 3                # xyz
NUM_FREQS = 4           # AnnealedSinusoidalEncoder num_freqs
GLO_NUM_EMB = 16        # GloEncoder vocabulary size
GLO_DIM = 8             # GloEncoder embedding dim
MLP_DEPTH = 4
MLP_HIDDEN = 32
MLP_SKIPS = (2,)
MLP_OUT = 3             # translation dim (asserted == 3 in the module)

PE_DIM = 2 * NUM_FREQS * D_PT                     # 24 sinusoidal features
D_IN = D_PT + PE_DIM + GLO_DIM                    # 3 + 24 + 8 = 35 (MLP input)
H = MLP_HIDDEN


# ------------------------------- Pallas kernel ------------------------------
def _warp_kernel(pts1_ref, meta_ref, wpts_ref, wfeat_ref, wmeta_ref,
                 whid_ref, bhid_ref, wout_ref, bout_ref, out_ref):
    """All operands transposed: activations are (C, TN), weights (out, in).

    wpts_ref  (24+32+32, 4): rows 0:24  -> [Wpe^T | phase]  (pre-sin features)
                             rows 24:56 -> [W0_pts^T | 0]   (layer-0 pts part)
                             rows 56:88 -> [W2_pts^T | 0]   (skip-layer pts part)
    wfeat_ref (64, 24): [W0_feat^T ; W2_feat^T] with annealing window folded in
    wmeta_ref (64, 16): [W0_meta^T @ glo^T + b0 ; W2_meta^T @ glo^T + b2]
    whid_ref  (96, 32): [W1^T ; W2_x^T ; W3^T]
    bhid_ref  (64, 1) : [b1 ; b3]
    """
    pts1 = pts1_ref[...]                                          # (4, TN)  [x;y;z;1]
    tn = pts1.shape[1]

    # One fused MXU dot produces the pre-sin features and both points
    # contributions (layer 0 + skip layer); phase rides on the ones-row.
    pts_dot = jnp.dot(wpts_ref[...], pts1,
                      preferred_element_type=jnp.float32)         # (88, TN)
    feat = jnp.sin(pts_dot[0:PE_DIM, :])                          # (24, TN)

    # GLO embedding gather fused as one_hot(metadata) on the sublane axis;
    # glo_table (and b0/b2) are pre-folded into wmeta in the wrapper.
    onehot = (lax.broadcasted_iota(jnp.int32, (GLO_NUM_EMB, tn), 0)
              == meta_ref[...]).astype(jnp.float32)               # (16, TN)

    # Combined layer-0 (rows 0:32) and skip-layer (rows 32:64) contributions.
    contrib = (jnp.dot(wfeat_ref[...], feat,
                       preferred_element_type=jnp.float32)
               + jnp.dot(wmeta_ref[...], onehot,
                         preferred_element_type=jnp.float32))     # (64, TN)

    # Layer 0 (bias b0 already folded into wmeta).
    h = jnp.maximum(contrib[0:H, :] + pts_dot[PE_DIM:PE_DIM + H, :], 0.0)
    # Layer 1.
    h = jnp.maximum(
        jnp.dot(whid_ref[pl.ds(0, H), :], h,
                preferred_element_type=jnp.float32)
        + bhid_ref[pl.ds(0, H), :], 0.0)
    # Layer 2 (skip): concat replaced by precomputed partial dots.
    h = jnp.maximum(
        jnp.dot(whid_ref[pl.ds(H, H), :], h,
                preferred_element_type=jnp.float32)
        + contrib[H:2 * H, :] + pts_dot[PE_DIM + H:PE_DIM + 2 * H, :], 0.0)
    # Layer 3.
    h = jnp.maximum(
        jnp.dot(whid_ref[pl.ds(2 * H, H), :], h,
                preferred_element_type=jnp.float32)
        + bhid_ref[pl.ds(H, H), :], 0.0)

    translation = (jnp.dot(wout_ref[...], h,
                           preferred_element_type=jnp.float32)
                   + bout_ref[...])                               # (3, TN)

    out_ref[...] = pts1[0:D_PT, :] + translation                  # warped points (3, TN)


# ------------------------------- wrapper -------------------------------------
def _pe_window(alpha):
    """Nerfies cosine-easing annealing window per frequency band."""
    bands = jnp.arange(NUM_FREQS, dtype=jnp.float32)
    x = jnp.clip(alpha - bands, 0.0, 1.0)
    return 0.5 * (1.0 + jnp.cos(jnp.pi * x + jnp.pi))             # (F,)


def _pe_static_params():
    """Static Wpe / phase so that sin(Wpe @ p + phase) == stacked sin/cos feats.

    Feature index layout matches reshape of (2, F, 3): j = b*F*3 + f*3 + d,
    b=0 -> sin branch, b=1 -> cos branch (phase pi/2).
    """
    scales = 2.0 ** np.arange(NUM_FREQS, dtype=np.float32)
    eye = np.eye(D_PT, dtype=np.float32)
    half = np.concatenate([scales[f] * eye for f in range(NUM_FREQS)], axis=1)
    pe_w = np.concatenate([half, half], axis=1)                   # (3, 24)
    phase = np.concatenate([np.zeros(NUM_FREQS * D_PT, np.float32),
                            np.full(NUM_FREQS * D_PT, 0.5 * np.pi, np.float32)])
    return jnp.asarray(pe_w), jnp.asarray(phase)                  # (3,24), (24,)


@jax.jit
def translation_field_forward(points, metadata, alpha, params):
    """Equivalent of TranslationField.forward(points, metadata,
    extra={'alpha': alpha}, return_jacobian=False, is_metadata_encoded=False)
    with metadata_encoder_type='glo'. Returns warped_points (N, 3)."""
    n = points.shape[0]
    if n % TN != 0:
        # TODO(synk): general N would need pl.cdiv + masking of the tail tile.
        raise ValueError(f"n={n} must be a multiple of TN={TN}")

    pe_w, phase = _pe_static_params()
    win = jnp.tile(jnp.repeat(_pe_window(alpha), D_PT), 2)        # (24,) per-feature window

    W0, W1, W2, W3 = params["Ws"]
    b0, b1, b2, b3 = params["bs"]
    glo_t = params["glo_table"].T                                 # (8, 16)

    c0 = D_PT                  # 3   : end of pts cols in W0
    c1 = D_PT + PE_DIM         # 27  : end of feat cols in W0
    s0 = H                     # 32  : end of h1 rows in W2
    s1 = H + D_PT              # 35
    s2 = H + D_PT + PE_DIM     # 59

    zcol = jnp.zeros((H, 1), jnp.float32)
    # Fused "points" weight: [Wpe^T|phase ; W0_pts^T|0 ; W2_pts^T|0]  -> (88, 4)
    w_pts = jnp.concatenate([
        jnp.concatenate([pe_w.T, phase[:, None]], axis=1),
        jnp.concatenate([W0[0:c0].T, zcol], axis=1),
        jnp.concatenate([W2[s0:s1].T, zcol], axis=1),
    ], axis=0)
    # Annealing window folded into the sinusoidal-feature weight columns. (64, 24)
    w_feat = jnp.concatenate([W0[c0:c1].T * win[None, :],
                              W2[s1:s2].T * win[None, :]], axis=0)
    # GLO table and layer biases b0/b2 folded into the one-hot weight. (64, 16)
    w_meta = jnp.concatenate([W0[c1:D_IN].T @ glo_t + b0.T,
                              W2[s2:].T @ glo_t + b2.T], axis=0)
    # Hidden-layer weights stacked: [W1^T ; W2_x^T ; W3^T]  -> (96, 32)
    w_hid = jnp.concatenate([W1.T, W2[0:s0].T, W3.T], axis=0)
    b_hid = jnp.concatenate([b1.T, b3.T], axis=0)                 # (64, 1)
    w_out = params["Wout"].T                                      # (3, 32)
    b_out = params["bout"].T                                      # (3, 1)

    # Transposed, lane-dense activations: [x;y;z;1] on sublanes, points on lanes.
    pts1_t = jnp.concatenate([points.T, jnp.ones((1, n), jnp.float32)], axis=0)
    meta_2d = metadata.astype(jnp.int32)[None, :]                 # (1, N)

    tiled = lambda c: pl.BlockSpec((c, TN), lambda i: (0, i))
    full = lambda a: pl.BlockSpec(a.shape, lambda i: (0, 0))

    out_t = pl.pallas_call(
        _warp_kernel,
        out_shape=jax.ShapeDtypeStruct((D_PT, n), jnp.float32),
        grid=(n // TN,),
        in_specs=[
            tiled(D_PT + 1),        # pts1 (4, TN)
            tiled(1),               # metadata ids (1, TN)
            full(w_pts), full(w_feat), full(w_meta),
            full(w_hid), full(b_hid), full(w_out), full(b_out),
        ],
        out_specs=pl.BlockSpec((D_PT, TN), lambda i: (0, i)),
        compiler_params=pltpu.CompilerParams(
            dimension_semantics=("parallel",)),
    )(pts1_t, meta_2d, w_pts, w_feat, w_meta, w_hid, b_hid, w_out, b_out)

    return out_t.T                                                # (N, 3)


# ------------------------------- reference -----------------------------------
def reference_forward(points, metadata, alpha, params):
    meta_embed = params["glo_table"][metadata]
    bands = jnp.arange(NUM_FREQS, dtype=jnp.float32)
    window = _pe_window(alpha)
    scales = 2.0 ** bands
    xb = points[:, None, :] * scales[None, :, None]               # (N, F, 3)
    four = jnp.sin(jnp.stack([xb, xb + 0.5 * jnp.pi], axis=1))    # (N, 2, F, 3)
    four = four * window[None, None, :, None]
    feat = four.reshape(points.shape[0], -1)
    inputs = jnp.concatenate([points, feat, meta_embed], axis=-1)
    x = inputs
    for i in range(MLP_DEPTH):
        if i in MLP_SKIPS:
            x = jnp.concatenate([x, inputs], axis=-1)
        x = jnp.maximum(x @ params["Ws"][i] + params["bs"][i], 0.0)
    translation = x @ params["Wout"] + params["bout"]
    return points + translation


# ------------------------------- params --------------------------------------
def init_params(key):
    ks = jax.random.split(key, 3 + 2 * MLP_DEPTH)
    params = {
        "glo_table": 0.1 * jax.random.normal(
            ks[0], (GLO_NUM_EMB, GLO_DIM), jnp.float32),
    }
    dims_in = []
    d = D_IN
    for i in range(MLP_DEPTH):
        if i in MLP_SKIPS:
            d = d + D_IN
        dims_in.append(d)
        d = MLP_HIDDEN
    Ws, bs = [], []
    for i in range(MLP_DEPTH):
        fan_in = dims_in[i]
        Ws.append((1.0 / np.sqrt(fan_in)) * jax.random.normal(
            ks[1 + 2 * i], (fan_in, MLP_HIDDEN), jnp.float32))
        bs.append(0.01 * jax.random.normal(
            ks[2 + 2 * i], (1, MLP_HIDDEN), jnp.float32))
    params["Ws"] = Ws
    params["bs"] = bs
    params["Wout"] = (1.0 / np.sqrt(MLP_HIDDEN)) * jax.random.normal(
        ks[1 + 2 * MLP_DEPTH], (MLP_HIDDEN, MLP_OUT), jnp.float32)
    params["bout"] = 0.01 * jax.random.normal(
        ks[2 + 2 * MLP_DEPTH], (1, MLP_OUT), jnp.float32)
    return params


# ------------------------------- main -----------------------------------------
if __name__ == "__main__":
    key = jax.random.PRNGKey(0)
    k_pts, k_meta, k_params = jax.random.split(key, 3)

    points = jax.random.normal(k_pts, (N_POINTS, D_PT), jnp.float32)
    metadata = jax.random.randint(k_meta, (N_POINTS,), 0, GLO_NUM_EMB,
                                  dtype=jnp.int32)
    alpha = jnp.float32(2.5)        # extra['alpha'] for the annealed encoder
    params = init_params(k_params)

    warped = translation_field_forward(points, metadata, alpha, params)
    warped = jax.block_until_ready(warped)

    ref = reference_forward(points, metadata, alpha, params)
    np.testing.assert_allclose(np.asarray(warped), np.asarray(ref),
                               rtol=2e-5, atol=2e-5)

    # TODO(synk): return_jacobian=True path is asserted unreachable in the
    # torch module and is not implemented here; 'time'/'blend' metadata
    # encoders are likewise not instantiated by this config.
    print("KERNEL_OK")
</pallas_src>

<mosaic_0001>
module attributes {stable_mosaic.version = 11 : i64} {
  func.func @_warp_kernel(%arg0: i32, %arg1: memref<4x256xf32, #tpu.memory_space<vmem>>, %arg2: memref<1x256xi32, #tpu.memory_space<vmem>>, %arg3: memref<88x4xf32, #tpu.memory_space<vmem>>, %arg4: memref<64x24xf32, #tpu.memory_space<vmem>>, %arg5: memref<64x16xf32, #tpu.memory_space<vmem>>, %arg6: memref<96x32xf32, #tpu.memory_space<vmem>>, %arg7: memref<64x1xf32, #tpu.memory_space<vmem>>, %arg8: memref<3x32xf32, #tpu.memory_space<vmem>>, %arg9: memref<3x1xf32, #tpu.memory_space<vmem>>, %arg10: memref<3x256xf32, #tpu.memory_space<vmem>>) attributes {dimension_semantics = [#tpu.dimension_semantics<parallel>], iteration_bounds = array<i64: 1>, scalar_prefetch = 0 : i64, scratch_operands = 0 : i64, tpu.core_type = #tpu.core_type<tc>, window_params = [{transform_indices = @transform_0, window_bounds = array<i64: 4, 256>}, {transform_indices = @transform_1, window_bounds = array<i64: 1, 256>}, {pipeline_mode = #tpu.pipeline_mode<synchronous>, transform_indices = @transform_2, window_bounds = array<i64: 88, 4>}, {pipeline_mode = #tpu.pipeline_mode<synchronous>, transform_indices = @transform_3, window_bounds = array<i64: 64, 24>}, {pipeline_mode = #tpu.pipeline_mode<synchronous>, transform_indices = @transform_4, window_bounds = array<i64: 64, 16>}, {pipeline_mode = #tpu.pipeline_mode<synchronous>, transform_indices = @transform_5, window_bounds = array<i64: 96, 32>}, {pipeline_mode = #tpu.pipeline_mode<synchronous>, transform_indices = @transform_6, window_bounds = array<i64: 64, 1>}, {pipeline_mode = #tpu.pipeline_mode<synchronous>, transform_indices = @transform_7, window_bounds = array<i64: 3, 32>}, {pipeline_mode = #tpu.pipeline_mode<synchronous>, transform_indices = @transform_8, window_bounds = array<i64: 3, 1>}, {transform_indices = @transform_9, window_bounds = array<i64: 3, 256>}]} {
    %c0 = arith.constant 0 : index
    %c0_0 = arith.constant 0 : index
    %0 = vector.load %arg1[%c0, %c0_0] : memref<4x256xf32, #tpu.memory_space<vmem>>, vector<4x256xf32>
    %c0_1 = arith.constant 0 : index
    %c0_2 = arith.constant 0 : index
    %1 = vector.load %arg3[%c0_1, %c0_2] : memref<88x4xf32, #tpu.memory_space<vmem>>, vector<88x4xf32>
    %cst = arith.constant dense<0.000000e+00> : vector<88x256xf32>
    %2 = tpu.matmul %1, %0, %cst {dimension_numbers = #tpu.dot_dimension_numbers<[1], [0], [0], [1], [0, 0, 1, 1], [], []>} : vector<88x4xf32>, vector<4x256xf32>, vector<88x256xf32> -> vector<88x256xf32>
    %3 = vector.extract_strided_slice %2 {offsets = [0, 0], sizes = [24, 256], strides = [1, 1]} : vector<88x256xf32> to vector<24x256xf32>
    %4 = math.sin %3 : vector<24x256xf32>
    %5 = tpu.iota {dimensions = array<i32: 0>} : vector<16x256xi32>
    %c0_3 = arith.constant 0 : index
    %c0_4 = arith.constant 0 : index
    %6 = vector.load %arg2[%c0_3, %c0_4] : memref<1x256xi32, #tpu.memory_space<vmem>>, vector<1x256xi32>
    %7 = vector.broadcast %6 : vector<1x256xi32> to vector<16x256xi32>
    %8 = arith.cmpi eq, %5, %7 : vector<16x256xi32>
    %9 = arith.extui %8 : vector<16x256xi1> to vector<16x256xi32>
    %10 = arith.sitofp %9 : vector<16x256xi32> to vector<16x256xf32>
    %c0_5 = arith.constant 0 : index
    %c0_6 = arith.constant 0 : index
    %11 = vector.load %arg4[%c0_5, %c0_6] : memref<64x24xf32, #tpu.memory_space<vmem>>, vector<64x24xf32>
    %cst_7 = arith.constant dense<0.000000e+00> : vector<64x256xf32>
    %12 = tpu.matmul %11, %4, %cst_7 {dimension_numbers = #tpu.dot_dimension_numbers<[1], [0], [0], [1], [0, 0, 1, 1], [], []>} : vector<64x24xf32>, vector<24x256xf32>, vector<64x256xf32> -> vector<64x256xf32>
    %c0_8 = arith.constant 0 : index
    %c0_9 = arith.constant 0 : index
    %13 = vector.load %arg5[%c0_8, %c0_9] : memref<64x16xf32, #tpu.memory_space<vmem>>, vector<64x16xf32>
    %cst_10 = arith.constant dense<0.000000e+00> : vector<64x256xf32>
    %14 = tpu.matmul %13, %10, %cst_10 {dimension_numbers = #tpu.dot_dimension_numbers<[1], [0], [0], [1], [0, 0, 1, 1], [], []>} : vector<64x16xf32>, vector<16x256xf32>, vector<64x256xf32> -> vector<64x256xf32>
    %15 = arith.addf %12, %14 : vector<64x256xf32>
    %16 = vector.extract_strided_slice %15 {offsets = [0, 0], sizes = [32, 256], strides = [1, 1]} : vector<64x256xf32> to vector<32x256xf32>
    %17 = vector.extract_strided_slice %2 {offsets = [24, 0], sizes = [32, 256], strides = [1, 1]} : vector<88x256xf32> to vector<32x256xf32>
    %18 = arith.addf %16, %17 : vector<32x256xf32>
    %cst_11 = arith.constant 0.000000e+00 : f32
    %19 = vector.broadcast %cst_11 : f32 to vector<32x256xf32>
    %20 = arith.maximumf %18, %19 : vector<32x256xf32>
    %c0_12 = arith.constant 0 : index
    %c0_13 = arith.constant 0 : index
    %21 = vector.load %arg6[%c0_12, %c0_13] : memref<96x32xf32, #tpu.memory_space<vmem>>, vector<32x32xf32>
    %cst_14 = arith.constant dense<0.000000e+00> : vector<32x256xf32>
    %22 = tpu.matmul %21, %20, %cst_14 {dimension_numbers = #tpu.dot_dimension_numbers<[1], [0], [0], [1], [0, 0, 1, 1], [], []>} : vector<32x32xf32>, vector<32x256xf32>, vector<32x256xf32> -> vector<32x256xf32>
    %c0_15 = arith.constant 0 : index
    %c0_16 = arith.constant 0 : index
    %23 = vector.load %arg7[%c0_15, %c0_16] : memref<64x1xf32, #tpu.memory_space<vmem>>, vector<32x1xf32>
    %24 = vector.broadcast %23 : vector<32x1xf32> to vector<32x256xf32>
    %25 = arith.addf %22, %24 : vector<32x256xf32>
    %cst_17 = arith.constant 0.000000e+00 : f32
    %26 = vector.broadcast %cst_17 : f32 to vector<32x256xf32>
    %27 = arith.maximumf %25, %26 : vector<32x256xf32>
    %c32 = arith.constant 32 : index
    %c0_18 = arith.constant 0 : index
    %28 = vector.load %arg6[%c32, %c0_18] : memref<96x32xf32, #tpu.memory_space<vmem>>, vector<32x32xf32>
    %cst_19 = arith.constant dense<0.000000e+00> : vector<32x256xf32>
    %29 = tpu.matmul %28, %27, %cst_19 {dimension_numbers = #tpu.dot_dimension_numbers<[1], [0], [0], [1], [0, 0, 1, 1], [], []>} : vector<32x32xf32>, vector<32x256xf32>, vector<32x256xf32> -> vector<32x256xf32>
    %30 = vector.extract_strided_slice %15 {offsets = [32, 0], sizes = [32, 256], strides = [1, 1]} : vector<64x256xf32> to vector<32x256xf32>
    %31 = arith.addf %29, %30 : vector<32x256xf32>
    %32 = vector.extract_strided_slice %2 {offsets = [56, 0], sizes = [32, 256], strides = [1, 1]} : vector<88x256xf32> to vector<32x256xf32>
    %33 = arith.addf %31, %32 : vector<32x256xf32>
    %cst_20 = arith.constant 0.000000e+00 : f32
    %34 = vector.broadcast %cst_20 : f32 to vector<32x256xf32>
    %35 = arith.maximumf %33, %34 : vector<32x256xf32>
    %c64 = arith.constant 64 : index
    %c0_21 = arith.constant 0 : index
    %36 = vector.load %arg6[%c64, %c0_21] : memref<96x32xf32, #tpu.memory_space<vmem>>, vector<32x32xf32>
    %cst_22 = arith.constant dense<0.000000e+00> : vector<32x256xf32>
    %37 = tpu.matmul %36, %35, %cst_22 {dimension_numbers = #tpu.dot_dimension_numbers<[1], [0], [0], [1], [0, 0, 1, 1], [], []>} : vector<32x32xf32>, vector<32x256xf32>, vector<32x256xf32> -> vector<32x256xf32>
    %c32_23 = arith.constant 32 : index
    %c0_24 = arith.constant 0 : index
    %38 = vector.load %arg7[%c32_23, %c0_24] : memref<64x1xf32, #tpu.memory_space<vmem>>, vector<32x1xf32>
    %39 = vector.broadcast %38 : vector<32x1xf32> to vector<32x256xf32>
    %40 = arith.addf %37, %39 : vector<32x256xf32>
    %cst_25 = arith.constant 0.000000e+00 : f32
    %41 = vector.broadcast %cst_25 : f32 to vector<32x256xf32>
    %42 = arith.maximumf %40, %41 : vector<32x256xf32>
    %c0_26 = arith.constant 0 : index
    %c0_27 = arith.constant 0 : index
    %43 = vector.load %arg8[%c0_26, %c0_27] : memref<3x32xf32, #tpu.memory_space<vmem>>, vector<3x32xf32>
    %cst_28 = arith.constant dense<0.000000e+00> : vector<3x256xf32>
    %44 = tpu.matmul %43, %42, %cst_28 {dimension_numbers = #tpu.dot_dimension_numbers<[1], [0], [0], [1], [0, 0, 1, 1], [], []>} : vector<3x32xf32>, vector<32x256xf32>, vector<3x256xf32> -> vector<3x256xf32>
    %c0_29 = arith.constant 0 : index
    %c0_30 = arith.constant 0 : index
    %45 = vector.load %arg9[%c0_29, %c0_30] : memref<3x1xf32, #tpu.memory_space<vmem>>, vector<3x1xf32>
    %46 = vector.broadcast %45 : vector<3x1xf32> to vector<3x256xf32>
    %47 = arith.addf %44, %46 : vector<3x256xf32>
    %48 = vector.extract_strided_slice %0 {offsets = [0, 0], sizes = [3, 256], strides = [1, 1]} : vector<4x256xf32> to vector<3x256xf32>
    %49 = arith.addf %48, %47 : vector<3x256xf32>
    %c0_31 = arith.constant 0 : index
    %c0_32 = arith.constant 0 : index
    %50 = vector.load %arg10[%c0_31, %c0_32] : memref<3x256xf32, #tpu.memory_space<vmem>>, vector<3x256xf32>
    tpu.vector_store %arg10[%c0_31, %c0_32], %49 {strides = array<i32>} : memref<3x256xf32, #tpu.memory_space<vmem>>, vector<3x256xf32>,
    return
  }
  func.func @transform_0(%arg0: i32) -> (i32, i32) {
    %c0_i32 = arith.constant 0 : i32
    %c0_i32_0 = arith.constant 0 : i32
    return %c0_i32, %arg0 : i32, i32
  }
  func.func @transform_1(%arg0: i32) -> (i32, i32) {
    %c0_i32 = arith.constant 0 : i32
    %c0_i32_0 = arith.constant 0 : i32
    return %c0_i32, %arg0 : i32, i32
  }
  func.func @transform_2(%arg0: i32) -> (i32, i32) {
    %c0_i32 = arith.constant 0 : i32
    %c0_i32_0 = arith.constant 0 : i32
    %c0_i32_1 = arith.constant 0 : i32
    return %c0_i32, %c0_i32_0 : i32, i32
  }
  func.func @transform_3(%arg0: i32) -> (i32, i32) {
    %c0_i32 = arith.constant 0 : i32
    %c0_i32_0 = arith.constant 0 : i32
    %c0_i32_1 = arith.constant 0 : i32
    return %c0_i32, %c0_i32_0 : i32, i32
  }
  func.func @transform_4(%arg0: i32) -> (i32, i32) {
    %c0_i32 = arith.constant 0 : i32
    %c0_i32_0 = arith.constant 0 : i32
    %c0_i32_1 = arith.constant 0 : i32
    return %c0_i32, %c0_i32_0 : i32, i32
  }
  func.func @transform_5(%arg0: i32) -> (i32, i32) {
    %c0_i32 = arith.constant 0 : i32
    %c0_i32_0 = arith.constant 0 : i32
    %c0_i32_1 = arith.constant 0 : i32
    return %c0_i32, %c0_i32_0 : i32, i32
  }
  func.func @transform_6(%arg0: i32) -> (i32, i32) {
    %c0_i32 = arith.constant 0 : i32
    %c0_i32_0 = arith.constant 0 : i32
    %c0_i32_1 = arith.constant 0 : i32
    return %c0_i32, %c0_i32_0 : i32, i32
  }
  func.func @transform_7(%arg0: i32) -> (i32, i32) {
    %c0_i32 = arith.constant 0 : i32
    %c0_i32_0 = arith.constant 0 : i32
    %c0_i32_1 = arith.constant 0 : i32
    return %c0_i32, %c0_i32_0 : i32, i32
  }
  func.func @transform_8(%arg0: i32) -> (i32, i32) {
    %c0_i32 = arith.constant 0 : i32
    %c0_i32_0 = arith.constant 0 : i32
    %c0_i32_1 = arith.constant 0 : i32
    return %c0_i32, %c0_i32_0 : i32, i32
  }
  func.func @transform_9(%arg0: i32) -> (i32, i32) {
    %c0_i32 = arith.constant 0 : i32
    %c0_i32_0 = arith.constant 0 : i32
    return %c0_i32, %arg0 : i32, i32
  }
}

</mosaic_0001>

<bundles_post_ra>
// kernel: tile.6
= control target key start
LH: loop header
LB: loop body
LE: loop exit
PB: predicated region body
PF: predicated region fallthrough
CT: control target
= control target key end

     0   :  { %vm7_vm0 = vcmask 23552   ;;  %s37_s8 = smov 3   ;;  %s38_s9 = smov 6   ;;  %vm13_vm1 = vcmask 97352   ;;  %vm19_vm2 = vcmask 72752   ;;  %vm25_vm3 = vcmask 48152   ;;  %s55_s0 = inlined_call_operand.vmem [shape: f32[4,3], index: 0, kind: input, shape index: {}]   ;;  %s56_s1 = inlined_call_operand.vmem [shape: f32[12], index: 1, kind: output, shape index: {}]  }
   0x1   :  { %v4_v0 = vld [vmem:[%s55_s0] sm:$0xf]  ;;  %s36_s0 = smov 9  }
   0x2   :  { %5 = vst [vmem:[#allocation1] sm:$0xf] %v4_v0 }
   0x9   :  { %v10_v1 = vld [vmem:[#allocation1 + $0x3] sm:$0x1]   ;;  %v22_v2 = vld [vmem:[#allocation1 + $0x1] sm:$0x1]   ;;  %v6_v3 = vld [vmem:[#allocation1] sm:$0x1]  }
   0xa   :  { %11 = vrot.lane.b32.xlu0 %v10_v1, %s36_s0  ;;  %23 = vrot.lane.b32.xlu1 %v22_v2, %s37_s8  ;;  %v16_v4 = vld [vmem:[#allocation1 + $0x2] sm:$0x1]   ;;  %8 = vst.msk [vmem:[#allocation0] sm:$0x1] %vm7_vm0, %v6_v3  }
   0xe   :  { %17 = vrot.lane.b32.xlu0 %v16_v4, %s38_s9 }
  0x7c   :  { %v12_v5 = vpop.permute.xlu0 %11   ;;  %v24_v6 = vpop.permute.xlu1 %23  }
  0x7d   :  { %14 = vst.msk [vmem:[#allocation0] sm:$0x1] %vm13_vm1, %v12_v5  }
  0x80   :  { %v18_v7 = vpop.permute.xlu0 %17  }
  0x81   :  { %20 = vst.msk [vmem:[#allocation0] sm:$0x1] %vm19_vm2, %v18_v7  }
  0x82   :  { %26 = vst.msk [vmem:[#allocation0] sm:$0x1] %vm25_vm3, %v24_v6  }
  0x89   :  { %v30_v8 = vld [vmem:[#allocation0] sm:$0x1] }
  0x8a   :  { %32 = vst [vmem:[%s56_s1] sm:$0x1] %v30_v8 }

// kernel: mul.13
= control target key start
LH: loop header
LB: loop body
LE: loop exit
PB: predicated region body
PF: predicated region fallthrough
CT: control target
= control target key end

     0   :  { %vm7_vm0 = vcmask 97280   ;;  %vm13_vm1 = vcmask 195680   ;;  %s39_s0 = inlined_call_operand.vmem [shape: f32[2,12], index: 0, kind: input, shape index: {}]   ;;  %s40_s1 = inlined_call_operand.vmem [shape: f32[24], index: 1, kind: output, shape index: {}]  }
   0x1   :  { %v4_v0 = vld [vmem:[%s39_s0] sm:$0x3]  ;;  %s22_s0 = smov 12  }
   0x2   :  { %5 = vst [vmem:[#allocation1] sm:$0x3] %v4_v0 }
   0x9   :  { %v10_v1 = vld [vmem:[#allocation1 + $0x1] sm:$0x1]   ;;  %v6_v2 = vld [vmem:[#allocation1] sm:$0x1]  }
   0xa   :  { %11 = vrot.lane.b32.xlu0 %v10_v1, %s22_s0  ;;  %8 = vst.msk [vmem:[#allocation0] sm:$0x1] %vm7_vm0, %v6_v2  }
  0x7c   :  { %v12_v3 = vpop.permute.xlu0 %11  }
  0x7d   :  { %14 = vst.msk [vmem:[#allocation0] sm:$0x1] %vm13_vm1, %v12_v3  }
  0x84   :  { %v18_v4 = vld [vmem:[#allocation0] sm:$0x1] }
  0x85   :  { %20 = vst [vmem:[%s40_s1] sm:$0x1] %v18_v4 }

// kernel: tile.7
= control target key start
LH: loop header
LB: loop body
LE: loop exit
PB: predicated region body
PF: predicated region fallthrough
CT: control target
= control target key end

     0   :  { %s22_s0 = inlined_call_operand.vmem [shape: f32[12], index: 0, kind: input, shape index: {}]   ;;  %s23_s1 = inlined_call_operand.vmem [shape: f32[2,12], index: 1, kind: output, shape index: {}]  }
   0x1   :  { %v4_v0 = vld [vmem:[%s22_s0] ss:$0 sm:$0xff] }
   0x2   :  { %5 = vst [vmem:[%s23_s1] sm:$0x3] %v4_v0 }

// kernel: translation_field_forward.1
= control target key start
LH: loop header
LB: loop body
LE: loop exit
PB: predicated region body
PF: predicated region fallthrough
CT: control target
= control target key end

     0   :  { %vm81_vm0 = vcmask 1043456   ;;  %v1910_v2 = vmov 0.0   ;;  %s2746_s0 = inlined_call_operand.vmem [shape: f32[4,256], index: 0, kind: input, shape index: {}]   ;;  %s2747_s1 = inlined_call_operand.vmem [shape: s32[1,256], index: 1, kind: input, shape index: {}]   ;;  %s2748_s2 = inlined_call_operand.vmem [shape: f32[88,4], index: 2, kind: input, shape index: {}]   ;;  %s2749_s3 = inlined_call_operand.vmem [shape: f32[64,24], index: 3, kind: input, shape index: {}]   ;;  %s2750_s4 = inlined_call_operand.vmem [shape: f32[64,16], index: 4, kind: input, shape index: {}]   ;;  %s2751_s5 = inlined_call_operand.vmem [shape: f32[96,32], index: 5, kind: input, shape index: {}]   ;;  %s2752_s6 = inlined_call_operand.vmem [shape: f32[64,1], index: 6, kind: input, shape index: {}]   ;;  %s2753_s7 = inlined_call_operand.vmem [shape: f32[3,32], index: 7, kind: input, shape index: {}]   ;;  %s2754_s8 = inlined_call_operand.vmem [shape: f32[3,1], index: 8, kind: input, shape index: {}]   ;;  %s2755_s9 = inlined_call_operand.hbm [shape: f32[3,256], index: 9, kind: output, shape index: {}]  }
   0x1   :  { %v33_v0 = vld [vmem:[%s2746_s0] sm:$0xff]  ;;  %150 = vmatprep.mubr.f32.mxu1 %v1910_v2  ;;  %970 = vmatprep.mubr.f32.mxu0 %v1910_v2 }
   0x2   :  { %v46_v1 = vcombine.high %v33_v0, %v33_v0 }
   0x3   :  { %14 = vsyncpa [#allocation3], 0  ;;  %v34_v3 = vld [vmem:[%s2748_s2] sm:$0xff]  ;;  %vm47_vm1 = vcmask 31744   ;;  %v35_v4 = vld [vmem:[%s2748_s2 + $0x8] sm:$0xff]  ;;  %s1919_s12 = smov [#allocation2]  }
   0x4   :  { %1670 = vmatprep.subr.msk.mxu1 %vm81_vm0, %v46_v1  ;;  %v36_v5 = vld [vmem:[%s2748_s2 + $0x10] sm:$0xff]  ;;  %v1911_v38 = vmov 683565275   ;;  %v1912_v42 = vmov 2475754826   ;;  %s1662_s13 = sshll.u32 %s1919_s12, 4  ;;  %s1663_s13 = int_to_ptr.vmem [resolvable:$true] %s1662_s13 }
   0x5   :  { %1671 = vmatpush1.msk.msra.mxu1 %vm81_vm0, %v33_v0  ;;  %v1913_v44 = vmov 2131351028   ;;  %v1914_v46 = vmov 2102212464   ;;  %v1915_v48 = vmov 920167782   ;;  %p1891_p1 = scmp.lt.s32.totalorder %s1663_s13, %s1663_s13 }
   0x6   :  { %1672 = vmatmul.mubr.msk.f32.vlgmr.msra.gmra.mrb[0].mxu1 %vm47_vm1, %v34_v3  ;;  %v1916_v55 = vmov 1326507024   ;;  %s1886_s16 = scalar_lea.vmem %s1663_s13, 128 }
   0x7   :  { %156 = vmatprep.mubr.f32.mxu1 %v1910_v2  ;;  %p1887_p0 = scmp.ne.s32.totalorder %s1663_s13, %s1886_s16  ;;  %p1892_p2 = scmp.lt.s32.totalorder %s1886_s16, %s1886_s16 }
   0x9   :  { %p1893_p3 = por %p1892_p2, %p1891_p1 }
   0xa   :  { %1673 = vmatmul.mubr.msk.f32.gmra.mrb[2].mxu1 %vm47_vm1, %v35_v4 }
   0xb   :  { %162 = vmatprep.mubr.f32.mxu1 %v1910_v2  ;;  %p1894_p4 = pnand %p1893_p3, %p1887_p0 }
   0xe   :  { %1674 = vmatmul.mubr.msk.f32.gmra.mrb[4].mxu1 %vm47_vm1, %v36_v5 }
   0xf   :  { %168 = vmatprep.mubr.f32.mxu1 %v1910_v2 }
  0xd9   :  { %v1990_v6 = vpop.f32.mrb[0].mxu1 }
  0xda   :  { %v217_v7 = vand.u32 2147483647, %v1990_v6  ;;  %v220_v8 = vand.u32 2139095040, %v1990_v6  ;;  %v1994_v9 = vpop.f32.mrb[1].mxu1 }
  0xdb   :  { %v321_v10 = vand.u32 2147483647, %v1994_v9  ;;  %v324_v11 = vand.u32 2139095040, %v1994_v9 }
  0xdc   :  { %v221_v12 = vshrl.u32 %v220_v8, 23  ;;  %v224_v13 = vand.u32 8388607, %v217_v7 }
  0xdd   :  { %v325_v14 = vshrl.u32 %v324_v11, 23  ;;  %v328_v15 = vand.u32 8388607, %v321_v10  ;;  %v2002_v16 = vpop.f32.mrb[2].mxu1 }
  0xde   :  { %v1683_v17 = vadd.s32 4294967169, %v221_v12  ;;  %v2004_v18 = vpop.f32.mrb[3].mxu1  ;;  %v428_v20 = vand.u32 2139095040, %v2002_v16  ;;  %v225_v22 = vor.u32 8388608, %v224_v13  ;;  %v425_v36 = vand.u32 2147483647, %v2002_v16 }
  0xdf   :  { %v1687_v19 = vadd.s32 4294967169, %v325_v14  ;;  %v329_v23 = vor.u32 8388608, %v328_v15 }
  0xe0   :  { %v227_v21 = vadd.s32 1, %v1683_v17  ;;  %v429_v25 = vshrl.u32 %v428_v20, 23  ;;  %v2011_v33 = vshll.u32 %v225_v22, 8 }
  0xe1   :  { %v331_v24 = vadd.s32 1, %v1687_v19  ;;  %v2007_v26 = vpop.f32.mrb[4].mxu1  ;;  %v2015_v35 = vshll.u32 %v329_v23, 8 }
  0xe2   :  { %vm228_vm2 = vcmp.gt.s32.totalorder %v227_v21, 0  ;;  %v2009_v27 = vpop.f32.mrb[5].mxu1  ;;  %v1691_v29 = vadd.s32 4294967169, %v429_v25 }
  0xe3   :  { %v229_v28 = vsel %vm228_vm2, %v227_v21, 0  ;;  %vm332_vm3 = vcmp.gt.s32.totalorder %v331_v24, 0 }
  0xe4   :  { %v230_v30 = vshrl.u32 %v229_v28, 5  ;;  %v231_v31 = vand.u32 31, %v229_v28  ;;  %v333_v32 = vsel %vm332_vm3, %v331_v24, 0  ;;  %v2019_v41 = vadd.s32 1, %v1691_v29 }
  0xe5   :  { %v2013_v34 = vshrl.u32 %v333_v32, 5  ;;  %v335_v40 = vand.u32 31, %v333_v32  ;;  %vm219_vm3 = vcmp.lt.s32.totalorder %v1990_v6, 0 }
  0xe6   :  { %v232_v37 = vsub.s32 32, %v231_v31  ;;  %v234_v39 = vshll.u32 %v1911_v38, %v231_v31  ;;  %v237_v43 = vshll.u32 %v1912_v42, %v231_v31  ;;  %v240_v45 = vshll.u32 %v1913_v44, %v231_v31 }
  0xe7   :  { %v243_v47 = vshll.u32 %v1914_v46, %v231_v31  ;;  %v246_v49 = vshll.u32 %v1915_v48, %v231_v31  ;;  %vm249_vm4 = vcmp.lt.s32.totalorder %v230_v30, 1  ;;  %vm250_vm5 = vcmp.lt.s32.totalorder %v230_v30, 2 }
  0xe8   :  { %v235_v50 = vshrl.u32 %v1912_v42, %v232_v37  ;;  %v238_v51 = vshrl.u32 %v1913_v44, %v232_v37  ;;  %v241_v52 = vshrl.u32 %v1914_v46, %v232_v37  ;;  %v233_v53 = vshrl.u32 %v1911_v38, %v232_v37 }
  0xe9   :  { %v244_v54 = vshrl.u32 %v1915_v48, %v232_v37  ;;  %v247_v56 = vshrl.u32 %v1916_v55, %v232_v37  ;;  %v336_v60 = vsub.s32 32, %v335_v40  ;;  %vm251_vm6 = vcmp.lt.s32.totalorder %v230_v30, 3 }
  0xea   :  { %v236_v57 = vor.u32 %v235_v50, %v234_v39  ;;  %v239_v58 = vor.u32 %v238_v51, %v237_v43  ;;  %v242_v59 = vor.u32 %v241_v52, %v240_v45  ;;  %vm252_vm7 = vcmp.lt.s32.totalorder %v230_v30, 4 }
  0xeb   :  { %v245_v61 = vor.u32 %v244_v54, %v243_v47  ;;  %v248_v62 = vor.u32 %v247_v56, %v246_v49  ;;  %v338_v11 = vshll.u32 %v1911_v38, %v335_v40  ;;  %v339_v14 = vshrl.u32 %v1912_v42, %v336_v60 }
  0xec   :  { %v253_v63 = vsel %vm249_vm4, %v233_v53, %v236_v57  ;;  %v254_v0 = vsel %vm252_vm7, %v242_v59, 2102212464  ;;  %v257_v1 = vsel %vm249_vm4, %v236_v57, %v239_v58  ;;  %v261_v3 = vsel %vm249_vm4, %v239_v58, %v242_v59 }
  0xed   :  { %v255_v4 = vsel %vm251_vm6, %v239_v58, %v254_v0  ;;  %v258_v5 = vsel %vm252_vm7, %v245_v61, 920167782  ;;  %v262_v8 = vsel %vm252_vm7, %v248_v62, 1326507024  ;;  %v341_v15 = vshll.u32 %v1912_v42, %v335_v40 }
  0xee   :  { %v259_v12 = vsel %vm251_vm6, %v242_v59, %v258_v5  ;;  %v263_v13 = vsel %vm251_vm6, %v245_v61, %v262_v8  ;;  %v256_v17 = vsel %vm250_vm5, %v253_v63, %v255_v4  ;;  %v342_v21 = vshrl.u32 %v1913_v44, %v336_v60 }
  0xef   :  { %v260_v19 = vsel %vm250_vm5, %v257_v1, %v259_v12  ;;  %v264_v20 = vsel %vm250_vm5, %v261_v3, %v263_v13  ;;  %v340_v28 = vor.u32 %v339_v14, %v338_v11  ;;  %v344_v31 = vshll.u32 %v1913_v44, %v335_v40 }
  0xf0   :  { %v2042_v22 = vmul.u32.u64.low %v2011_v33, %v264_v20  ;;  %v2043_v23 = vmul.u32.u64.high %v2011_v33, %v264_v20, %v2042_v22  ;;  %v2046_v24 = vmul.u32.u64.low %v2011_v33, %v260_v19  ;;  %v2047_v25 = vmul.u32.u64.high %v2011_v33, %v260_v19, %v2046_v24 }
  0xf1   :  { %v343_v29 = vor.u32 %v342_v21, %v341_v15  ;;  %v345_v32 = vshrl.u32 %v1914_v46, %v336_v60  ;;  %v337_v30 = vshrl.u32 %v1911_v38, %v336_v60  ;;  %v347_v37 = vshll.u32 %v1914_v46, %v335_v40 }
  0xf2   :  { %v348_v39 = vshrl.u32 %v1915_v48, %v336_v60  ;;  %v351_v43 = vshrl.u32 %v1916_v55, %v336_v60  ;;  %v272_v45 = vmul.u32 %v2011_v33, %v256_v17  ;;  %v350_v49 = vshll.u32 %v1915_v48, %v335_v40 }
  0xf3   :  { %v346_v47 = vor.u32 %v345_v32, %v344_v31  ;;  %vm353_vm8 = vcmp.lt.s32.totalorder %v2013_v34, 1  ;;  %vm274_vm9 = vc.u32 %v2043_v23, %v2046_v24  ;;  %v275_v50 = vadd.s32 1, %v2047_v25 }
  0xf4   :  { %v349_v51 = vor.u32 %v348_v39, %v347_v37  ;;  %vm354_vm10 = vcmp.lt.s32.totalorder %v2013_v34, 2  ;;  %v352_v52 = vor.u32 %v351_v43, %v350_v49  ;;  %vm355_vm11 = vcmp.lt.s32.totalorder %v2013_v34, 3 }
  0xf5   :  { %vm356_vm12 = vcmp.lt.s32.totalorder %v2013_v34, 4  ;;  %v361_v53 = vsel %vm353_vm8, %v340_v28, %v343_v29  ;;  %v276_v33 = vsel %vm274_vm9, %v275_v50, %v2047_v25  ;;  %v365_v56 = vsel %vm353_vm8, %v343_v29, %v346_v47 }
  0xf6   :  { %v358_v54 = vsel %vm356_vm12, %v346_v47, 2102212464  ;;  %v362_v40 = vsel %vm356_vm12, %v349_v51, 920167782  ;;  %v277_v57 = vadd.s32 %v276_v33, %v272_v45  ;;  %v357_v58 = vsel %vm353_vm8, %v337_v30, %v340_v28 }
  0xf7   :  { %v363_v59 = vsel %vm355_vm11, %v346_v47, %v362_v40  ;;  %v366_v60 = vsel %vm356_vm12, %v352_v52, 1326507024  ;;  %v359_v61 = vsel %vm355_vm11, %v343_v29, %v358_v54  ;;  %vm436_vm13 = vcmp.gt.s32.totalorder %v2019_v41, 0 }
  0xf8   :  { %v364_v62 = vsel %vm354_vm10, %v361_v53, %v363_v59  ;;  %v367_v63 = vsel %vm355_vm11, %v349_v51, %v366_v60  ;;  %v278_v0 = vadd.s32 536870912, %v277_v57  ;;  %v437_v11 = vsel %vm436_vm13, %v2019_v41, 0 }
  0xf9   :  { %v368_v1 = vsel %vm354_vm10, %v365_v56, %v367_v63  ;;  %v2072_v3 = vmul.u32.u64.low %v2015_v35, %v364_v62  ;;  %v2073_v4 = vmul.u32.u64.high %v2015_v35, %v364_v62, %v2072_v3  ;;  %v360_v13 = vsel %vm354_vm10, %v357_v58, %v359_v61 }
  0xfa   :  { %v2077_v5 = vmul.u32.u64.low %v2015_v35, %v368_v1  ;;  %v2078_v8 = vmul.u32.u64.high %v2015_v35, %v368_v1, %v2077_v5  ;;  %v2081_v12 = vshrl.u32 %v278_v0, 30  ;;  %v439_v14 = vand.u32 31, %v437_v11 }
  0xfb   :  { %v432_v15 = vand.u32 8388607, %v425_v36  ;;  %v379_v19 = vadd.s32 1, %v2073_v4  ;;  %v532_v21 = vand.u32 2139095040, %v2004_v18  ;;  %v376_v22 = vmul.u32 %v2015_v35, %v360_v13 }
  0xfc   :  { %v280_v17 = vshll.u32 %v2081_v12, 30  ;;  %v440_v20 = vsub.s32 32, %v439_v14  ;;  %vm378_vm14 = vc.u32 %v2078_v8, %v2072_v3  ;;  %v529_v31 = vand.u32 2147483647, %v2004_v18 }
  0xfd   :  { %v380_v34 = vsel %vm378_vm14, %v379_v19, %v2073_v4  ;;  %v433_v30 = vor.u32 8388608, %v432_v15  ;;  %v533_v35 = vshrl.u32 %v532_v21, 23  ;;  %v438_v43 = vshrl.u32 %v437_v11, 5 }
  0xfe   :  { %v2093_v41 = vsub.s32 %v277_v57, %v280_v17  ;;  %v381_v25 = vadd.s32 %v380_v34, %v376_v22  ;;  %v443_v28 = vshrl.u32 %v1912_v42, %v440_v20  ;;  %v446_v29 = vshrl.u32 %v1913_v44, %v440_v20 }
  0xff   :  { %v449_v37 = vshrl.u32 %v1914_v46, %v440_v20  ;;  %v442_v45 = vshll.u32 %v1911_v38, %v439_v14  ;;  %v445_v47 = vshll.u32 %v1912_v42, %v439_v14  ;;  %v448_v50 = vshll.u32 %v1913_v44, %v439_v14 }
 0x100   :  { %v283_v32 = vsub.s32 0, %v2093_v41  ;;  %v382_v39 = vadd.s32 536870912, %v381_v25  ;;  %v451_v51 = vshll.u32 %v1914_v46, %v439_v14  ;;  %v452_v52 = vshrl.u32 %v1915_v48, %v440_v20 }
 0x101   :  { %v444_v33 = vor.u32 %v443_v28, %v442_v45  ;;  %v447_v54 = vor.u32 %v446_v29, %v445_v47  ;;  %v455_v40 = vshrl.u32 %v1916_v55, %v440_v20  ;;  %v450_v57 = vor.u32 %v449_v37, %v448_v50 }
 0x102   :  { %v1684_v49 = vmin.u32 %v283_v32, %v2093_v41  ;;  %v383_v53 = vshrl.u32 %v382_v39, 30  ;;  %v453_v58 = vor.u32 %v452_v52, %v451_v51  ;;  %v2108_v59 = vshll.u32 %v433_v30, 8 }
 0x103   :  { %v273_v60 = vadd.s32 %v2046_v24, %v2043_v23  ;;  %v454_v62 = vshll.u32 %v1915_v48, %v439_v14  ;;  %v1695_v63 = vadd.s32 4294967169, %v533_v35  ;;  %vm457_vm15 = vcmp.lt.s32.totalorder %v438_v43, 1 }
 0x104   :  { %v285_v56 = vclz %v1684_v49  ;;  %v384_v61 = vshll.u32 %v383_v53, 30  ;;  %vm459_vm0 = vcmp.lt.s32.totalorder %v438_v43, 3  ;;  %vm460_vm2 = vcmp.lt.s32.totalorder %v438_v43, 4 }
 0x105   :  { %v456_v4 = vor.u32 %v455_v40, %v454_v62  ;;  %v465_v5 = vsel %vm457_vm15, %v444_v33, %v447_v54  ;;  %v466_v11 = vsel %vm460_vm2, %v453_v58, 920167782  ;;  %v303_v23 = vsub.s32 4, %v2081_v12 }
 0x106   :  { %v1685_v0 = vadd.s32 4294967294, %v285_v56  ;;  %v2114_v1 = vsub.s32 %v381_v25, %v384_v61  ;;  %vm323_vm5 = vcmp.lt.s32.totalorder %v1994_v9, 0  ;;  %v441_v24 = vshrl.u32 %v1911_v38, %v440_v20 }
 0x107   :  { %v467_v13 = vsel %vm459_vm0, %v450_v57, %v466_v11  ;;  %vm458_vm6 = vcmp.lt.s32.totalorder %v438_v43, 2  ;;  %v462_v17 = vsel %vm460_vm2, %v450_v57, 2102212464  ;;  %vm2126_vm7 = vcmp.le.f32.partialorder %v217_v7, 0.7853982  ;;  %v37_v43 = vld [vmem:[%s2748_s2 + $0x18] sm:$0xff] }
 0x108   :  { %vm1686_vm4 = vcmp.lt.s32.totalorder %v1685_v0, 0  ;;  %v387_v15 = vsub.s32 0, %v2114_v1  ;;  %v468_v34 = vsel %vm458_vm6, %v465_v5, %v467_v13  ;;  %v469_v20 = vsel %vm457_vm15, %v447_v54, %v450_v57  ;;  %1675 = vmatmul.mubr.msk.f32.gmra.mrb[6].mxu1 %vm47_vm1, %v37_v43 }
 0x109   :  { %v288_v14 = vsel %vm1686_vm4, 0, %v1685_v0  ;;  %v407_v28 = vsub.s32 4, %v383_v53  ;;  %v461_v29 = vsel %vm457_vm15, %v441_v24, %v444_v33  ;;  %v470_v32 = vsel %vm460_vm2, %v456_v4, 1326507024  ;;  %174 = vmatprep.mubr.f32.mxu1 %v1910_v2  ;;  %v38_v24 = vld [vmem:[%s2748_s2 + $0x20] sm:$0xff] }
 0x10a   :  { %v289_v21 = vsub.s32 32, %v288_v14  ;;  %v293_v22 = vsub.s32 4294967266, %v288_v14  ;;  %v1688_v25 = vmin.u32 %v387_v15, %v2114_v1  ;;  %vm2137_vm8 = vcmp.le.f32.partialorder %v321_v10, 0.7853982 }
 0x10b   :  { %v463_v35 = vsel %vm459_vm0, %v447_v54, %v462_v17  ;;  %v471_v39 = vsel %vm459_vm0, %v453_v58, %v470_v32  ;;  %v2145_v49 = vmul.u32.u64.low %v2108_v59, %v468_v34  ;;  %v2146_v50 = vmul.u32.u64.high %v2108_v59, %v468_v34, %v2145_v49 }
 0x10c   :  { %v291_v30 = vshrl.u32 %v273_v60, %v289_v21  ;;  %v294_v37 = vadd.s32 127, %v293_v22  ;;  %v389_v45 = vclz %v1688_v25  ;;  %v472_v47 = vsel %vm458_vm6, %v469_v20, %v471_v39  ;;  %1676 = vmatmul.mubr.msk.f32.gmra.mrb[8].mxu1 %vm47_vm1, %v38_v24 }
 0x10d   :  { %v290_v51 = vshll.u32 %v2093_v41, %v288_v14  ;;  %v2150_v33 = vmul.u32.u64.low %v2108_v59, %v472_v47  ;;  %v2151_v10 = vmul.u32.u64.high %v2108_v59, %v472_v47, %v2150_v33  ;;  %v464_v56 = vsel %vm458_vm6, %v461_v29, %v463_v35  ;;  %180 = vmatprep.mubr.f32.mxu1 %v1910_v2  ;;  %v39_v47 = vld [vmem:[%s2748_s2 + $0x28] sm:$0xff] }
 0x10e   :  { %v295_v52 = vshll.u32 %v294_v37, 23  ;;  %v1689_v40 = vadd.s32 4294967294, %v389_v45  ;;  %v536_v54 = vand.u32 8388607, %v529_v31  ;;  %v539_v57 = vadd.s32 1, %v1695_v63 }
 0x10f   :  { %v292_v58 = vor.u32 %v291_v30, %v290_v51  ;;  %v304_v61 = vsel %vm219_vm3, %v303_v23, %v2081_v12  ;;  %v636_v41 = vand.u32 2139095040, %v2007_v26  ;;  %v408_v62 = vsel %vm323_vm5, %v407_v28, %v383_v53 }
 0x110   :  { %v296_v60 = vor.u32 4788187, %v295_v52  ;;  %vm1690_vm9 = vcmp.lt.s32.totalorder %v1689_v40, 0  ;;  %v483_v0 = vadd.s32 1, %v2146_v50  ;;  %vm540_vm10 = vcmp.gt.s32.totalorder %v539_v57, 0  ;;  %1677 = vmatmul.mubr.msk.f32.gmra.mrb[10].mxu1 %vm47_vm1, %v39_v47 }
 0x111   :  { %v392_v4 = vsel %vm1690_vm9, 0, %v1689_v40  ;;  %v480_v5 = vmul.u32 %v2108_v59, %v464_v56  ;;  %vm482_vm11 = vc.u32 %v2151_v10, %v2145_v49  ;;  %v306_v12 = vsel %vm2126_vm7, 0, %v304_v61  ;;  %186 = vmatprep.mubr.f32.mxu1 %v1910_v2 }
 0x112   :  { %v297_v63 = vand.u32 2147483647, %v296_v60  ;;  %v397_v11 = vsub.s32 4294967266, %v392_v4  ;;  %v484_v53 = vsel %vm482_vm11, %v483_v0, %v2146_v50  ;;  %v633_v23 = vand.u32 2147483647, %v2007_v26 }
 0x113   :  { %v299_v13 = vcvt.s32.f32 %v292_v58  ;;  %v393_v59 = vsub.s32 32, %v392_v4  ;;  %v485_v14 = vadd.s32 %v484_v53, %v480_v5  ;;  %v541_v15 = vsel %vm540_vm10, %v539_v57, 0 }
 0x114   :  { %v398_v17 = vadd.s32 127, %v397_v11  ;;  %v410_v21 = vsel %vm2137_vm8, 0, %v408_v62  ;;  %v537_v22 = vor.u32 8388608, %v536_v54  ;;  %v543_v34 = vand.u32 31, %v541_v15 }
 0x115   :  { %v300_v20 = vmul.f32 %v299_v13, %v297_v63  ;;  %v377_v25 = vadd.s32 %v2072_v3, %v2078_v8  ;;  %v486_v28 = vadd.s32 536870912, %v485_v14  ;;  %v637_v29 = vshrl.u32 %v636_v41, 23  ;;  %v40_v41 = vld [vmem:[%s2748_s2 + $0x30] sm:$0xff] }
 0x116   :  { %v399_v32 = vshll.u32 %v398_v17, 23  ;;  %v544_v30 = vsub.s32 32, %v543_v34  ;;  %v2184_v37 = vadd.s32 3, %v306_v12  ;;  %v2186_v39 = vadd.s32 3, %v410_v21  ;;  %1678 = vmatmul.mubr.msk.f32.gmra.mrb[12].mxu1 %vm47_vm1, %v40_v41 }
 0x117   :  { %v395_v35 = vshrl.u32 %v377_v25, %v393_v59  ;;  %v2188_v45 = vshrl.u32 %v486_v28, 30  ;;  %v394_v3 = vshll.u32 %v2114_v1, %v392_v4  ;;  %v2195_v8 = vadd.s32 %v2145_v49, %v2151_v10  ;;  %192 = vmatprep.mubr.f32.mxu1 %v1910_v2 }
 0x118   :  { %v2197_v50 = vshll.u32 %v537_v22, 8  ;;  %v2201_v51 = vand.u32 8388607, %v633_v23  ;;  %v301_v52 = vxor.u32 2147483648, %v300_v20  ;;  %v547_v40 = vshrl.u32 %v1912_v42, %v544_v30 }
 0x119   :  { %v488_v33 = vshll.u32 %v2188_v45, 30  ;;  %v1699_v56 = vadd.s32 4294967169, %v637_v29  ;;  %v400_v54 = vor.u32 4788187, %v399_v32  ;;  %v546_v1 = vshll.u32 %v1911_v38, %v543_v34 }
 0x11a   :  { %v550_v49 = vshrl.u32 %v1913_v44, %v544_v30  ;;  %v553_v10 = vshrl.u32 %v1914_v46, %v544_v30  ;;  %v396_v57 = vor.u32 %v395_v35, %v394_v3  ;;  %v549_v60 = vshll.u32 %v1912_v42, %v543_v34 }
 0x11b   :  { %v2210_v58 = vsub.s32 %v485_v14, %v488_v33  ;;  %v552_v61 = vshll.u32 %v1913_v44, %v543_v34  ;;  %v542_v62 = vshrl.u32 %v541_v15, 5  ;;  %v548_v0 = vor.u32 %v547_v40, %v546_v1 }
 0x11c   :  { %v555_v43 = vshll.u32 %v1914_v46, %v543_v34  ;;  %v641_v63 = vor.u32 8388608, %v2201_v51  ;;  %v551_v5 = vor.u32 %v550_v49, %v549_v60  ;;  %v556_v11 = vshrl.u32 %v1915_v48, %v544_v30 }
 0x11d   :  { %v491_v4 = vsub.s32 0, %v2210_v58  ;;  %v554_v12 = vor.u32 %v553_v10, %v552_v61  ;;  %v401_v53 = vand.u32 2147483647, %v400_v54  ;;  %v558_v24 = vshll.u32 %v1915_v48, %v543_v34 }
 0x11e   :  { %v559_v13 = vshrl.u32 %v1916_v55, %v544_v30  ;;  %v643_v59 = vadd.s32 1, %v1699_v56  ;;  %v302_v14 = vsel %vm219_vm3, %v301_v52, %v300_v20  ;;  %v403_v15 = vcvt.s32.f32 %v396_v57 }
 0x11f   :  { %vm427_vm12 = vcmp.lt.s32.totalorder %v2002_v16, 0  ;;  %v1692_v17 = vmin.u32 %v491_v4, %v2210_v58  ;;  %v557_v21 = vor.u32 %v556_v11, %v555_v43  ;;  %v545_v22 = vshrl.u32 %v1911_v38, %v544_v30 }
 0x120   :  { %v560_v25 = vor.u32 %v559_v13, %v558_v24  ;;  %vm561_vm13 = vcmp.lt.s32.totalorder %v542_v62, 1  ;;  %vm564_vm14 = vcmp.lt.s32.totalorder %v542_v62, 4  ;;  %v511_v28 = vsub.s32 4, %v2188_v45 }
 0x121   :  { %v493_v34 = vclz %v1692_v17  ;;  %v566_v29 = vsel %vm564_vm14, %v554_v12, 2102212464  ;;  %v569_v32 = vsel %vm561_vm13, %v548_v0, %v551_v5  ;;  %v404_v35 = vmul.f32 %v403_v15, %v401_v53 }
 0x122   :  { %vm562_vm15 = vcmp.lt.s32.totalorder %v542_v62, 2  ;;  %vm563_vm0 = vcmp.lt.s32.totalorder %v542_v62, 3  ;;  %v570_v20 = vsel %vm564_vm14, %v557_v21, 920167782  ;;  %v565_v3 = vsel %vm561_vm13, %v545_v22, %v548_v0 }
 0x123   :  { %v1693_v47 = vadd.s32 4294967294, %v493_v34  ;;  %v571_v52 = vsel %vm563_vm0, %v554_v12, %v570_v20  ;;  %v573_v33 = vsel %vm561_vm13, %v551_v5, %v554_v12  ;;  %v567_v40 = vsel %vm563_vm0, %v551_v5, %v566_v29 }
 0x124   :  { %v572_v56 = vsel %vm562_vm15, %v569_v32, %v571_v52  ;;  %v574_v30 = vsel %vm564_vm14, %v560_v25, 1326507024  ;;  %vm644_vm2 = vcmp.gt.s32.totalorder %v643_v59, 0  ;;  %v405_v10 = vxor.u32 2147483648, %v404_v35 }
 0x125   :  { %vm1694_vm3 = vcmp.lt.s32.totalorder %v1693_v47, 0  ;;  %v575_v54 = vsel %vm563_vm0, %v557_v21, %v574_v30  ;;  %v2233_v1 = vmul.u32.u64.low %v2197_v50, %v572_v56  ;;  %v2234_v49 = vmul.u32.u64.high %v2197_v50, %v572_v56, %v2233_v1 }
 0x126   :  { %v496_v57 = vsel %vm1694_vm3, 0, %v1693_v47  ;;  %v576_v60 = vsel %vm562_vm15, %v573_v33, %v575_v54  ;;  %v645_v61 = vsel %vm644_vm2, %v643_v59, 0  ;;  %v2241_v41 = vsel %vm2126_vm7, %v1990_v6, %v302_v14 }
 0x127   :  { %v497_v0 = vsub.s32 32, %v496_v57  ;;  %v501_v43 = vsub.s32 4294967266, %v496_v57  ;;  %v568_v4 = vsel %vm562_vm15, %v565_v3, %v567_v40  ;;  %v2247_v5 = vsel %vm427_vm12, %v511_v28, %v2188_v45 }
 0x128   :  { %v2250_v12 = vmul.u32.u64.low %v2197_v50, %v576_v60  ;;  %v2251_v11 = vmul.u32.u64.high %v2197_v50, %v576_v60, %v2250_v12  ;;  %v647_v53 = vand.u32 31, %v645_v61  ;;  %v498_v24 = vshll.u32 %v2210_v58, %v496_v57 }
 0x129   :  { %v499_v19 = vshrl.u32 %v2195_v8, %v497_v0  ;;  %v502_v13 = vadd.s32 127, %v501_v43  ;;  %v587_v59 = vadd.s32 1, %v2234_v49  ;;  %v406_v62 = vsel %vm323_vm5, %v405_v10, %v404_v35 }
 0x12a   :  { %v584_v14 = vmul.u32 %v2197_v50, %v568_v4  ;;  %v648_v15 = vsub.s32 32, %v647_v53  ;;  %v650_v45 = vshll.u32 %v1911_v38, %v647_v53  ;;  %v2260_v22 = vshrl.u32 %v645_v61, 5 }
 0x12b   :  { %v500_v17 = vor.u32 %v499_v19, %v498_v24  ;;  %v503_v21 = vshll.u32 %v502_v13, 23  ;;  %v653_v25 = vshll.u32 %v1912_v42, %v647_v53  ;;  %vm586_vm4 = vc.u32 %v2251_v11, %v2233_v1 }
 0x12c   :  { %v651_v8 = vshrl.u32 %v1912_v42, %v648_v15  ;;  %v656_v58 = vshll.u32 %v1913_v44, %v647_v53  ;;  %v659_v34 = vshll.u32 %v1914_v46, %v647_v53  ;;  %v588_v50 = vsel %vm586_vm4, %v587_v59, %v2234_v49 }
 0x12d   :  { %v504_v28 = vor.u32 4788187, %v503_v21  ;;  %v654_v29 = vshrl.u32 %v1913_v44, %v648_v15  ;;  %v662_v32 = vshll.u32 %v1915_v48, %v647_v53  ;;  %vm2273_vm5 = vcmp.le.f32.partialorder %v425_v36, 0.7853982 }
 0x12e   :  { %v589_v20 = vadd.s32 %v588_v50, %v584_v14  ;;  %v652_v47 = vor.u32 %v651_v8, %v650_v45  ;;  %v657_v3 = vshrl.u32 %v1914_v46, %v648_v15  ;;  %v660_v52 = vshrl.u32 %v1915_v48, %v648_v15 }
 0x12f   :  { %v505_v33 = vand.u32 2147483647, %v504_v28  ;;  %v507_v40 = vcvt.s32.f32 %v500_v17  ;;  %v655_v56 = vor.u32 %v654_v29, %v653_v25  ;;  %v663_v30 = vshrl.u32 %v1916_v55, %v648_v15 }
 0x130   :  { %v590_v54 = vadd.s32 536870912, %v589_v20  ;;  %v658_v49 = vor.u32 %v657_v3, %v656_v58  ;;  %v661_v10 = vor.u32 %v660_v52, %v659_v34  ;;  %v681_v36 = vshll.u32 %v641_v63, 8 }
 0x131   :  { %v508_v57 = vmul.f32 %v507_v40, %v505_v33  ;;  %v664_v60 = vor.u32 %v663_v30, %v662_v32  ;;  %vm665_vm6 = vcmp.lt.s32.totalorder %v2260_v22, 1  ;;  %vm668_vm7 = vcmp.lt.s32.totalorder %v2260_v22, 4 }
 0x132   :  { %v591_v61 = vshrl.u32 %v590_v54, 30  ;;  %vm667_vm9 = vcmp.lt.s32.totalorder %v2260_v22, 3  ;;  %v673_v0 = vsel %vm665_vm6, %v652_v47, %v655_v56  ;;  %v674_v43 = vsel %vm668_vm7, %v661_v10, 920167782 }
 0x133   :  { %vm531_vm10 = vcmp.lt.s32.totalorder %v2004_v18, 0  ;;  %v649_v4 = vshrl.u32 %v1911_v38, %v648_v15  ;;  %vm666_vm11 = vcmp.lt.s32.totalorder %v2260_v22, 2  ;;  %v670_v51 = vsel %vm668_vm7, %v658_v49, 2102212464 }
 0x134   :  { %v675_v63 = vsel %vm667_vm9, %v658_v49, %v674_v43  ;;  %v509_v12 = vxor.u32 2147483648, %v508_v57  ;;  %v592_v53 = vshll.u32 %v591_v61, 30  ;;  %v677_v19 = vsel %vm665_vm6, %v655_v56, %v658_v49 }
 0x135   :  { %v676_v24 = vsel %vm666_vm11, %v673_v0, %v675_v63  ;;  %v409_v13 = vsel %vm2137_vm8, %v1994_v9, %v406_v62  ;;  %v678_v59 = vsel %vm668_vm7, %v664_v60, 1326507024  ;;  %1861 = vcosq.f32 %v2241_v41  ;;  %v2358_v60 = vld [vmem:[%s2747_s1] sm:$0x3] }
 0x136   :  { %v2299_v14 = vmul.u32.u64.low %v681_v36, %v676_v24  ;;  %v2300_v15 = vmul.u32.u64.high %v681_v36, %v676_v24, %v2299_v14  ;;  %vm2306_vm13 = vcmp.le.f32.partialorder %v529_v31, 0.7853982  ;;  %v2310_v17 = vsub.s32 %v589_v20, %v592_v53 }
 0x137   :  { %v679_v21 = vsel %vm667_vm9, %v661_v10, %v678_v59  ;;  %v737_v7 = vand.u32 2147483647, %v2009_v27  ;;  %v514_v62 = vsel %vm2273_vm5, 0, %v2247_v5  ;;  %v669_v25 = vsel %vm665_vm6, %v649_v4, %v652_v47 }
 0x138   :  { %v671_v31 = vsel %vm667_vm9, %v655_v56, %v670_v51  ;;  %v680_v8 = vsel %vm666_vm11, %v677_v19, %v679_v21  ;;  %1863 = vsinq.f32 %v409_v13  ;;  %v510_v58 = vsel %vm427_vm12, %v509_v12, %v508_v57 }
 0x139   :  { %v595_v34 = vsub.s32 0, %v2310_v17  ;;  %v615_v28 = vsub.s32 4, %v591_v61  ;;  %1865 = vcosq.f32 %v409_v13  ;;  %v740_v5 = vand.u32 2139095040, %v2009_v27 }
 0x13a   :  { %v2327_v50 = vmul.u32.u64.low %v681_v36, %v680_v8  ;;  %v2328_v29 = vmul.u32.u64.high %v681_v36, %v680_v8, %v2327_v50  ;;  %v672_v20 = vsel %vm666_vm11, %v669_v25, %v671_v31  ;;  %v691_v47 = vadd.s32 1, %v2300_v15 }
 0x13b   :  { %v1696_v32 = vmin.u32 %v595_v34, %v2310_v17  ;;  %v841_v3 = vlaneseq  ;;  %1867 = vsinq.f32 %v2241_v41  ;;  %v2337_v52 = vand.u32 3, %v2186_v39 }
 0x13c   :  { %v513_v33 = vsel %vm2273_vm5, %v2002_v16, %v510_v58  ;;  %v741_v40 = vshrl.u32 %v740_v5, 23  ;;  %v616_v30 = vsel %vm531_vm10, %v615_v28, %v591_v61  ;;  %v744_v22 = vand.u32 8388607, %v737_v7 }
 0x13d   :  { %v597_v56 = vclz %v1696_v32  ;;  %v2346_v54 = vshrl.u32 %v841_v3, 7  ;;  %v2348_v49 = vadd.s32 3, %v514_v62  ;;  %v688_v41 = vmul.u32 %v681_v36, %v672_v20 }
 0x13e   :  { %vm690_vm8 = vc.u32 %v2328_v29, %v2299_v14  ;;  %v1703_v39 = vadd.s32 4294967169, %v741_v40  ;;  %1869 = vcosq.f32 %v513_v33  ;;  %v585_v35 = vadd.s32 %v2233_v1, %v2251_v11 }
 0x13f   :  { %v1697_v10 = vadd.s32 4294967294, %v597_v56  ;;  %v692_v57 = vsel %vm690_vm8, %v691_v47, %v2300_v15  ;;  %v618_v61 = vsel %vm2306_vm13, 0, %v616_v30  ;;  %v851_v43 = vsub.s32 1, %v2346_v54  ;;  %v2363_v4 = vpop.eup %1861 }
 0x140   :  { %v693_v36 = vadd.s32 %v692_v57, %v688_v41  ;;  %v747_v0 = vadd.s32 1, %v1703_v39  ;;  %1871 = vsinq.f32 %v513_v33  ;;  %v745_v1 = vor.u32 8388608, %v744_v22 }
 0x141   :  { %vm1698_vm12 = vcmp.lt.s32.totalorder %v1697_v10, 0  ;;  %v2366_v11 = vadd.s32 8, %v2346_v54  ;;  %v852_v12 = vrot.slane %v2358_v60, %v851_v43  ;;  %v2371_v13 = vadd.s32 3, %v618_v61 }
 0x142   :  { %v600_v51 = vsel %vm1698_vm12, 0, %v1697_v10  ;;  %v694_v63 = vadd.s32 536870912, %v693_v36  ;;  %vm748_vm14 = vcmp.gt.s32.totalorder %v747_v0, 0  ;;  %v2369_v53 = vpop.eup %1863  ;;  %v2383_v50 = vshll.u32 %v745_v1, 8 }
 0x143   :  { %v601_v24 = vsub.s32 32, %v600_v51  ;;  %v605_v19 = vsub.s32 4294967266, %v600_v51  ;;  %v749_v59 = vsel %vm748_vm14, %v747_v0, 0  ;;  %v2373_v15 = vpop.eup %1865  ;;  %vm854_vm15 = vcmp.eq.s32.totalorder %v2346_v54, %v852_v12 }
 0x144   :  { %v2375_v21 = vshrl.u32 %v694_v63, 30  ;;  %v751_v62 = vand.u32 31, %v749_v59  ;;  %v602_v25 = vshll.u32 %v2310_v17, %v600_v51  ;;  %vm856_vm0 = vcmp.eq.s32.totalorder %v2366_v11, %v852_v12 }
 0x145   :  { %v603_v31 = vshrl.u32 %v585_v35, %v601_v24  ;;  %v606_v8 = vadd.s32 127, %v605_v19  ;;  %v2380_v58 = vpop.eup %1867  ;;  %vm1744_vm2 = vmpackc.low %vm856_vm0, %vm854_vm15  ;;  %v418_v5 = vxor.u32 2147483648, %v2369_v53  ;;  %v1917_v47 = vmov 1.0|1.0  }
 0x146   :  { %v696_v34 = vshll.u32 %v2375_v21, 30  ;;  %v752_v28 = vsub.s32 32, %v751_v62  ;;  %1745 = vmatprep.subr.msk.bf16.mxu0 %vm1744_vm2, %v1917_v47  ;;  %v847_v17 = vsub.s32 0, %v2346_v54  ;;  %v421_v3 = vxor.u32 2147483648, %v2373_v15 }
 0x147   :  { %v604_v32 = vor.u32 %v603_v31, %v602_v25  ;;  %v607_v20 = vshll.u32 %v606_v8, 23  ;;  %v750_v40 = vshrl.u32 %v749_v59, 5  ;;  %v754_v56 = vshll.u32 %v1911_v38, %v751_v62 }
 0x148   :  { %v2389_v33 = vsub.s32 %v693_v36, %v696_v34  ;;  %v755_v30 = vshrl.u32 %v1912_v42, %v752_v28  ;;  %v2393_v22 = vpop.eup %1869  ;;  %v757_v39 = vshll.u32 %v1912_v42, %v751_v62  ;;  %v758_v35 = vshrl.u32 %v1913_v44, %v752_v28 }
 0x149   :  { %v608_v41 = vor.u32 4788187, %v607_v20  ;;  %v760_v10 = vshll.u32 %v1913_v44, %v751_v62  ;;  %v611_v57 = vcvt.s32.f32 %v604_v32  ;;  %v761_v36 = vshrl.u32 %v1914_v46, %v752_v28 }
 0x14a   :  { %v699_v61 = vsub.s32 0, %v2389_v33  ;;  %v756_v0 = vor.u32 %v755_v30, %v754_v56  ;;  %v2400_v43 = vpop.eup %1871  ;;  %v759_v51 = vor.u32 %v758_v35, %v757_v39  ;;  %v763_v63 = vshll.u32 %v1914_v46, %v751_v62 }
 0x14b   :  { %v609_v1 = vand.u32 2147483647, %v608_v41  ;;  %v764_v12 = vshrl.u32 %v1915_v48, %v752_v28  ;;  %v762_v24 = vor.u32 %v761_v36, %v760_v10  ;;  %v766_v19 = vshll.u32 %v1915_v48, %v751_v62 }
 0x14c   :  { %v1700_v42 = vmin.u32 %v699_v61, %v2389_v33  ;;  %v767_v44 = vshrl.u32 %v1916_v55, %v752_v28  ;;  %v753_v25 = vshrl.u32 %v1911_v38, %v752_v28  ;;  %v848_v8 = vrot.slane %v2358_v60, %v847_v17 }
 0x14d   :  { %v612_v59 = vmul.f32 %v611_v57, %v609_v1  ;;  %v765_v31 = vor.u32 %v764_v12, %v763_v63  ;;  %vm769_vm3 = vcmp.lt.s32.totalorder %v750_v40, 1  ;;  %vm772_vm4 = vcmp.lt.s32.totalorder %v750_v40, 4 }
 0x14e   :  { %v701_v34 = vclz %v1700_v42  ;;  %v768_v32 = vor.u32 %v767_v44, %v766_v19  ;;  %vm771_vm5 = vcmp.lt.s32.totalorder %v750_v40, 3  ;;  %v777_v20 = vsel %vm769_vm3, %v756_v0, %v759_v51 }
 0x14f   :  { %v613_v46 = vxor.u32 2147483648, %v612_v59  ;;  %v778_v56 = vsel %vm772_vm4, %v765_v31, 920167782  ;;  %v774_v41 = vsel %vm772_vm4, %v762_v24, 2102212464  ;;  %v781_v62 = vsel %vm769_vm3, %v759_v51, %v762_v24 }
 0x150   :  { %v1701_v30 = vadd.s32 4294967294, %v701_v34  ;;  %v779_v48 = vsel %vm771_vm5, %v762_v24, %v778_v56  ;;  %vm770_vm6 = vcmp.lt.s32.totalorder %v750_v40, 2  ;;  %v773_v38 = vsel %vm769_vm3, %v753_v25, %v756_v0 }
 0x151   :  { %v614_v55 = vsel %vm531_vm10, %v613_v46, %v612_v59  ;;  %v782_v28 = vsel %vm772_vm4, %v768_v32, 1326507024  ;;  %v780_v17 = vsel %vm770_vm6, %v777_v20, %v779_v48  ;;  %v775_v10 = vsel %vm771_vm5, %v759_v51, %v774_v41 }
 0x152   :  { %v617_v60 = vsel %vm2306_vm13, %v2004_v18, %v614_v55  ;;  %vm1702_vm7 = vcmp.lt.s32.totalorder %v1701_v30, 0  ;;  %v783_v39 = vsel %vm771_vm5, %v765_v31, %v782_v28  ;;  %vm853_vm9 = vcmp.eq.s32.totalorder %v2346_v54, %v848_v8 }
 0x153   :  { %1873 = vcosq.f32 %v617_v60  ;;  %v2417_v35 = vsel %vm1702_vm7, 0, %v1701_v30  ;;  %v784_v57 = vsel %vm770_vm6, %v781_v62, %v783_v39  ;;  %vm417_vm10 = vcmp.eq.s32.totalorder %v2337_v52, 0 }
 0x154   :  { %1875 = vsinq.f32 %v617_v60  ;;  %v709_v61 = vsub.s32 4294967266, %v2417_v35  ;;  %v2425_v45 = vmul.u32.u64.low %v2383_v50, %v784_v57  ;;  %v2426_v0 = vmul.u32.u64.high %v2383_v50, %v784_v57, %v2425_v45 }
 0x155   :  { %v2429_v36 = vmul.u32.u64.low %v2383_v50, %v780_v17  ;;  %v2430_v1 = vmul.u32.u64.high %v2383_v50, %v780_v17, %v2429_v36  ;;  %v776_v51 = vsel %vm770_vm6, %v773_v38, %v775_v10  ;;  %vm855_vm11 = vcmp.eq.s32.totalorder %v2366_v11, %v848_v8 }
 0x156   :  { %v2433_v63 = vadd.s32 127, %v709_v61  ;;  %vm420_vm13 = vcmp.eq.s32.totalorder %v2337_v52, 2  ;;  %v311_v54 = vand.u32 3, %v2184_v37  ;;  %v2440_v12 = vand.u32 3, %v2371_v13  ;;  %vm1746_vm8 = vmpackc.low %vm855_vm11, %vm853_vm9  ;;  %v873_v37 = vld [vmem:[%s2750_s4] sm:$0xff] }
 0x157   :  { %v419_v42 = vsel %vm417_vm10, %v2373_v15, %v418_v5  ;;  %v422_v24 = vsel %vm420_vm13, %v421_v3, %v2369_v53  ;;  %vm517_vm12 = vweird.f32 %v2002_v16  ;;  %v519_v11 = vand.u32 3, %v2348_v49  ;;  %1747 = vmatpush1.bf16.msk.msra.mxu0 %vm1746_vm8, %v1917_v47  ;;  %v874_v3 = vld [vmem:[%s2750_s4 + $0x8] sm:$0xff]  ;;  %v876_v16 = vld [vmem:[%s2750_s4 + $0x18] sm:$0xff] }
 0x158   :  { %v689_v40 = vadd.s32 %v2299_v14, %v2328_v29  ;;  %vm881_vm14 = vcmask 130048   ;;  %vm416_vm15 = vcmp.lt.s32.totalorder %v2337_v52, 2  ;;  %vm309_vm0 = vweird.f32 %v1990_v6 }
 0x159   :  { %v705_v53 = vsub.s32 32, %v2417_v35  ;;  %v792_v13 = vmul.u32 %v2383_v50, %v776_v51  ;;  %vm794_vm2 = vc.u32 %v2426_v0, %v2429_v36  ;;  %v795_v14 = vadd.s32 1, %v2430_v1 }
 0x15a   :  { %v706_v29 = vshll.u32 %v2389_v33, %v2417_v35  ;;  %v711_v49 = vshll.u32 %v2433_v63, 23  ;;  %vm413_vm3 = vweird.f32 %v1994_v9  ;;  %v423_v15 = vsel %vm416_vm15, %v419_v42, %v422_v24  ;;  %1715 = vmatmul.mubr.msk.f32.vlgmr.msra.gmra.mrb[0].mxu0 %vm881_vm14, %v873_v37  ;;  %v877_v9 = vld [vmem:[%s2750_s4 + $0x20] sm:$0xff]  ;;  %v879_v37 = vld [vmem:[%s2750_s4 + $0x30] sm:$0xff] }
 0x15b   :  { %v314_v52 = vxor.u32 2147483648, %v2380_v58  ;;  %v796_v5 = vsel %vm794_vm2, %v795_v14, %v2430_v1  ;;  %vm628_vm4 = vcmp.eq.s32.totalorder %v2440_v12, 2  ;;  %vm313_vm5 = vcmp.eq.s32.totalorder %v311_v54, 0  ;;  %976 = vmatprep.mubr.f32.mxu0 %v1910_v2 }
 0x15c   :  { %v317_v50 = vxor.u32 2147483648, %v2363_v4  ;;  %v797_v47 = vadd.s32 %v796_v5, %v792_v13  ;;  %vm312_vm6 = vcmp.lt.s32.totalorder %v311_v54, 2  ;;  %vm316_vm7 = vcmp.eq.s32.totalorder %v311_v54, 2  ;;  %v878_v54 = vld [vmem:[%s2750_s4 + $0x28] sm:$0xff] }
 0x15d   :  { %v315_v33 = vsel %vm313_vm5, %v2363_v4, %v314_v52  ;;  %v1874_v19 = vpop.eup %1873  ;;  %vm520_vm9 = vcmp.lt.s32.totalorder %v519_v11, 2  ;;  %v522_v59 = vxor.u32 2147483648, %v2400_v43  ;;  %v525_v25 = vxor.u32 2147483648, %v2393_v22 }
 0x15e   :  { %v318_v44 = vsel %vm316_vm7, %v317_v50, %v2380_v58  ;;  %v1876_v31 = vpop.eup %1875  ;;  %v798_v8 = vadd.s32 536870912, %v797_v47  ;;  %v629_v34 = vxor.u32 2147483648, %v1874_v19  ;;  %vm521_vm10 = vcmp.eq.s32.totalorder %v519_v11, 0  ;;  %1716 = vmatmul.mubr.msk.f32.gmra.mrb[2].mxu0 %vm881_vm14, %v874_v3  ;;  %v875_v58 = vld [vmem:[%s2750_s4 + $0x10] sm:$0xff] }
 0x15f   :  { %vm524_vm11 = vcmp.eq.s32.totalorder %v519_v11, 2  ;;  %v626_v32 = vxor.u32 2147483648, %v1876_v31  ;;  %v319_v46 = vsel %vm312_vm6, %v315_v33, %v318_v44  ;;  %v523_v4 = vsel %vm521_vm10, %v2393_v22, %v522_v59  ;;  %982 = vmatprep.mubr.f32.mxu0 %v1910_v2 }
 0x160   :  { %v526_v20 = vsel %vm524_vm11, %v525_v25, %v2400_v43  ;;  %v2483_v56 = vshrl.u32 %v798_v8, 30  ;;  %vm625_vm13 = vcmp.eq.s32.totalorder %v2440_v12, 0  ;;  %v630_v30 = vsel %vm628_vm4, %v629_v34, %v1876_v31 }
 0x161   :  { %v527_v41 = vsel %vm520_vm9, %v523_v4, %v526_v20  ;;  %v707_v48 = vshrl.u32 %v689_v40, %v705_v53  ;;  %vm624_vm8 = vcmp.lt.s32.totalorder %v2440_v12, 2  ;;  %v627_v22 = vsel %vm625_vm13, %v1874_v19, %v626_v32 }
 0x162   :  { %v528_v43 = vsel %vm517_vm12, nan, %v527_v41  ;;  %v800_v62 = vshll.u32 %v2483_v56, 30  ;;  %vm621_vm15 = vweird.f32 %v2004_v18  ;;  %v631_v55 = vsel %vm624_vm8, %v627_v22, %v630_v30  ;;  %1717 = vmatmul.mubr.msk.f32.gmra.mrb[4].mxu0 %vm881_vm14, %v875_v58 }
 0x163   :  { %v320_v38 = vsel %vm309_vm0, nan, %v319_v46  ;;  %v712_v28 = vor.u32 4788187, %v711_v49  ;;  %v424_v60 = vsel %vm413_vm3, nan, %v423_v15  ;;  %v632_v17 = vsel %vm621_vm15, nan, %v631_v55  ;;  %988 = vmatprep.mubr.f32.mxu0 %v1910_v2 }
 0x164   :  { %v1750_v39 = vpack.c.bf16 %v528_v43, %v320_v38  ;;  %v801_v35 = vsub.s32 %v797_v47, %v800_v62  ;;  %v1748_v18 = vpack.c.bf16 %v632_v17, %v424_v60  ;;  %v708_v10 = vor.u32 %v707_v48, %v706_v29 }
 0x165   :  { %v713_v6 = vand.u32 2147483647, %v712_v28  ;;  %v793_v24 = vadd.s32 %v2429_v36, %v2426_v0  ;;  %vm635_vm0 = vcmp.lt.s32.totalorder %v2007_v26, 0  ;;  %v880_v36 = vld [vmem:[%s2750_s4 + $0x38] sm:$0xff]  ;;  %vm2534_vm2 = vcmp.le.f32.partialorder %v633_v23, 0.7853982 }
 0x166   :  { %v803_v57 = vsub.s32 0, %v801_v35  ;;  %1749 = vmatprep.subr.bf16.mxu0 %v1748_v18  ;;  %1718 = vmatmul.mubr.msk.f32.gmra.mrb[6].mxu0 %vm881_vm14, %v876_v16  ;;  %v715_v45 = vcvt.s32.f32 %v708_v10  ;;  %v719_v50 = vsub.s32 4, %v2375_v21  ;;  %v823_v23 = vsub.s32 4, %v2483_v56  ;;  %v868_v16 = vld [vmem:[%s2749_s3 + $0x18] sm:$0xff] }
 0x167   :  { %994 = vmatprep.mubr.f32.mxu0 %v1910_v2  ;;  %1751 = vmatpush1.bf16.msra.mxu0 %v1750_v39  ;;  %vm739_vm3 = vcmp.lt.s32.totalorder %v2009_v27, 0  ;;  %vm829_vm11 = vweird.f32 %v2009_v27  ;;  %vm725_vm13 = vweird.f32 %v2007_v26  ;;  %v865_v39 = vld [vmem:[%s2749_s3] sm:$0xff]  ;;  %vm1019_vm8 = vcmask 195584  }
 0x168   :  { %v1704_v61 = vmin.u32 %v803_v57, %v801_v35  ;;  %v716_v63 = vmul.f32 %v715_v45, %v713_v6  ;;  %v720_v19 = vsel %vm635_vm0, %v719_v50, %v2375_v21  ;;  %v824_v25 = vsel %vm739_vm3, %v823_v23, %v2483_v56 }
 0x169   :  { %v722_v31 = vsel %vm2534_vm2, 0, %v720_v19 }
 0x16a   :  { %v805_v1 = vclz %v1704_v61  ;;  %1719 = vmatmul.mubr.msk.f32.gmra.mrb[8].mxu0 %vm881_vm14, %v877_v9  ;;  %v717_v12 = vxor.u32 2147483648, %v716_v63  ;;  %v726_v32 = vadd.s32 3, %v722_v31  ;;  %v41_v9 = vld [vmem:[%s2748_s2 + $0x38] sm:$0xff] }
 0x16b   :  { %1000 = vmatprep.mubr.f32.mxu0 %v1910_v2  ;;  %1679 = vmatmul.mubr.msk.f32.gmra.mrb[14].mxu1 %vm47_vm1, %v41_v9 }
 0x16c   :  { %v1705_v51 = vadd.s32 4294967294, %v805_v1  ;;  %v718_v29 = vsel %vm635_vm0, %v717_v12, %v716_v63  ;;  %v727_v20 = vand.u32 3, %v726_v32  ;;  %198 = vmatprep.mubr.f32.mxu1 %v1910_v2  ;;  %v42_v63 = vld [vmem:[%s2748_s2 + $0x40] sm:$0xff]  ;;  %v44_v12 = vld [vmem:[%s2748_s2 + $0x50] sm:$0xff] }
 0x16d   :  { %v721_v52 = vsel %vm2534_vm2, %v2007_v26, %v718_v29  ;;  %v867_v26 = vld [vmem:[%s2749_s3 + $0x10] sm:$0xff]  ;;  %v1439_v29 = vld [vmem:[%s2752_s6 + $0x38] sm:$0xff] }
 0x16e   :  { %vm1706_vm12 = vcmp.lt.s32.totalorder %v1705_v51, 0  ;;  %1720 = vmatmul.mubr.msk.f32.gmra.mrb[10].mxu0 %vm881_vm14, %v878_v54  ;;  %1877 = vcosq.f32 %v721_v52  ;;  %vm729_vm4 = vcmp.eq.s32.totalorder %v727_v20, 0  ;;  %vm732_vm5 = vcmp.eq.s32.totalorder %v727_v20, 2  ;;  %v43_v54 = vld [vmem:[%s2748_s2 + $0x48] sm:$0xff] }
 0x16f   :  { %v808_v42 = vsel %vm1706_vm12, 0, %v1705_v51  ;;  %1006 = vmatprep.mubr.f32.mxu0 %v1910_v2  ;;  %1879 = vsinq.f32 %v721_v52  ;;  %vm728_vm9 = vcmp.lt.s32.totalorder %v727_v20, 2  ;;  %1680 = vmatmul.mubr.msk.f32.gmra.mrb[16].mxu1 %vm47_vm1, %v42_v63 }
 0x170   :  { %v809_v11 = vsub.s32 32, %v808_v42  ;;  %v813_v40 = vsub.s32 4294967266, %v808_v42  ;;  %v810_v53 = vshll.u32 %v801_v35, %v808_v42  ;;  %204 = vmatprep.mubr.f32.mxu1 %v1910_v2  ;;  %v1177_v42 = vld [vmem:[%s2752_s6] sm:$0xff] }
 0x172   :  { %v811_v13 = vshrl.u32 %v793_v24, %v809_v11  ;;  %v814_v14 = vadd.s32 127, %v813_v40  ;;  %1721 = vmatmul.mubr.msk.f32.gmra.mrb[12].mxu0 %vm881_vm14, %v879_v37  ;;  %v1918_v24 = vmov 0   ;;  %v1179_v11 = vld [vmem:[%s2752_s6 + $0x10] sm:$0xff]  ;;  %v1178_v40 = vld [vmem:[%s2752_s6 + $0x8] sm:$0xff]  ;;  %v1180_v37 = vld [vmem:[%s2752_s6 + $0x18] sm:$0xff] }
 0x173   :  { %1012 = vmatprep.mubr.f32.mxu0 %v1910_v2  ;;  %1681 = vmatmul.mubr.msk.f32.gmra.mrb[18].mxu1 %vm47_vm1, %v43_v54 }
 0x174   :  { %v812_v49 = vor.u32 %v811_v13, %v810_v53  ;;  %v815_v0 = vshll.u32 %v814_v14, 23  ;;  %210 = vmatprep.mubr.f32.mxu1 %v1910_v2  ;;  %1858 = vset.pattern.permute.xlu0 %v1918_v24  ;;  %v1436_v53 = vld [vmem:[%s2752_s6 + $0x20] sm:$0xff]  ;;  %v1437_v13 = vld [vmem:[%s2752_s6 + $0x28] sm:$0xff]  ;;  %v1438_v14 = vld [vmem:[%s2752_s6 + $0x30] sm:$0xff] }
 0x175   :  { %1859 = vset.pattern.permute.xlu1 %v1918_v24  ;;  %1183 = vperm.xlu0 %1858, %v1177_v42  }
 0x176   :  { %v816_v5 = vor.u32 4788187, %v815_v0  ;;  %1722 = vmatmul.mubr.msk.f32.gmra.mrb[14].mxu0 %vm881_vm14, %v880_v36  ;;  %v819_v3 = vcvt.s32.f32 %v812_v49  ;;  %vm738_vm14 = vcmp.le.f32.partialorder %v737_v7, 0.7853982  ;;  %1193 = vperm.xlu1 %1859, %v1179_v11   ;;  %v1570_v49 = vld [vmem:[%s2754_s8] sm:$0x7] }
 0x177   :  { %1108 = vmatprep.mubr.f32.mxu0 %v1910_v2  ;;  %v826_v34 = vsel %vm738_vm14, 0, %v824_v25  ;;  %1682 = vmatmul.mubr.msk.f32.gmra.mrb[20].mxu1 %vm47_vm1, %v44_v12  ;;  %vm1201_vm1 = vcmask 261120  }
 0x178   :  { %v817_v47 = vand.u32 2147483647, %v816_v5  ;;  %v1878_v46 = vpop.eup %1877  ;;  %v830_v4 = vadd.s32 3, %v826_v34  ;;  %1278 = vmatprep.mubr.f32.mxu1 %v1910_v2 }
 0x179   :  { %v1880_v21 = vpop.eup %1879  ;;  %v733_v30 = vxor.u32 2147483648, %v1878_v46  ;;  %1188 = vperm.xlu0 %1858, %v1178_v40  }
 0x17a   :  { %v820_v33 = vmul.f32 %v819_v3, %v817_v47  ;;  %v730_v58 = vxor.u32 2147483648, %v1880_v21  ;;  %v831_v41 = vand.u32 3, %v830_v4  ;;  %1198 = vperm.xlu1 %1859, %v1180_v37  }
 0x17b   :  { %v734_v43 = vsel %vm732_vm5, %v733_v30, %v1880_v21 }
 0x17c   :  { %v821_v44 = vxor.u32 2147483648, %v820_v33  ;;  %v731_v22 = vsel %vm729_vm4, %v1878_v46, %v730_v58  ;;  %vm836_vm6 = vcmp.eq.s32.totalorder %v831_v41, 2  ;;  %vm833_vm7 = vcmp.eq.s32.totalorder %v831_v41, 0 }
 0x17d   :  { %vm832_vm10 = vcmp.lt.s32.totalorder %v831_v41, 2  ;;  %v735_v28 = vsel %vm728_vm9, %v731_v22, %v734_v43  ;;  %1442 = vperm.xlu0 %1858, %v1436_v53   ;;  %v1173_v22 = vld [vmem:[%s2751_s5] sm:$0xff]  ;;  %v1174_v43 = vld [vmem:[%s2751_s5 + $0x8] sm:$0xff] }
 0x17e   :  { %v822_v59 = vsel %vm739_vm3, %v821_v44, %v820_v33  ;;  %v736_v35 = vsel %vm725_vm13, nan, %v735_v28  ;;  %1447 = vperm.xlu1 %1859, %v1437_v13  }
 0x17f   :  { %v825_v8 = vsel %vm738_vm14, %v2009_v27, %v822_v59  ;;  %v866_v27 = vld [vmem:[%s2749_s3 + $0x8] sm:$0xff] }
 0x180   :  { %1881 = vcosq.f32 %v825_v8 }
 0x181   :  { %1883 = vsinq.f32 %v825_v8  ;;  %1452 = vperm.xlu0 %1858, %v1438_v14  }
 0x182   :  { %1457 = vperm.xlu1 %1859, %v1439_v29  }
 0x185   :  { %1573 = vperm.xlu0 %1858, %v1570_v49  }
 0x18a   :  { %v1882_v7 = vpop.eup %1881 }
 0x18b   :  { %v1884_v56 = vpop.eup %1883  ;;  %v837_v48 = vxor.u32 2147483648, %v1882_v7 }
 0x18c   :  { %v834_v62 = vxor.u32 2147483648, %v1884_v56 }
 0x18d   :  { %v838_v55 = vsel %vm836_vm6, %v837_v48, %v1884_v56 }
 0x18e   :  { %v835_v38 = vsel %vm833_vm7, %v1882_v7, %v834_v62  ;;  %v1175_v62 = vld [vmem:[%s2751_s5 + $0x10] sm:$0xff] }
 0x18f   :  { %v839_v60 = vsel %vm832_vm10, %v835_v38, %v838_v55  ;;  %v1176_v55 = vld [vmem:[%s2751_s5 + $0x18] sm:$0xff] }
 0x190   :  { %v840_v17 = vsel %vm829_vm11, nan, %v839_v60 }
 0x191   :  { %1048 = vmatprep.subr.mxu0 %v840_v17 }
 0x192   :  { %1049 = vmatpush1.msra.mxu0 %v736_v35 }
 0x193   :  { %1723 = vmatmul.mubr.msk.f32.vlgmr.msra.gmra.mrb[0].mxu0 %vm1019_vm8, %v865_v39 }
 0x194   :  { %1114 = vmatprep.mubr.f32.mxu0 %v1910_v2 }
 0x197   :  { %1724 = vmatmul.mubr.msk.f32.gmra.mrb[2].mxu0 %vm1019_vm8, %v866_v27 }
 0x198   :  { %1120 = vmatprep.mubr.f32.mxu0 %v1910_v2 }
 0x19b   :  { %1725 = vmatmul.mubr.msk.f32.gmra.mrb[4].mxu0 %vm1019_vm8, %v867_v26 }
 0x19c   :  { %1126 = vmatprep.mubr.f32.mxu0 %v1910_v2 }
 0x19f   :  { %1726 = vmatmul.mubr.msk.f32.gmra.mrb[6].mxu0 %vm1019_vm8, %v868_v16  ;;  %v869_v16 = vld [vmem:[%s2749_s3 + $0x20] sm:$0xff] }
 0x1a0   :  { %1132 = vmatprep.mubr.f32.mxu0 %v1910_v2 }
 0x1a3   :  { %1727 = vmatmul.mubr.msk.f32.gmra.mrb[8].mxu0 %vm1019_vm8, %v869_v16 }
 0x1a4   :  { %1138 = vmatprep.mubr.f32.mxu0 %v1910_v2 }
 0x1db   :  { %v170_v18 = vpop.f32.mrb[6].mxu1 }
 0x1dc   :  { %v172_v10 = vpop.f32.mrb[7].mxu1 }
 0x1df   :  { %v176_v57 = vpop.f32.mrb[8].mxu1 }
 0x1e0   :  { %v178_v6 = vpop.f32.mrb[9].mxu1 }
 0x1e3   :  { %v182_v61 = vpop.f32.mrb[10].mxu1 }
 0x1e4   :  { %v184_v45 = vpop.f32.mrb[11].mxu1 }
 0x1e9   :  { %v188_v1 = vpop.f32.mrb[12].mxu1 }
 0x1ea   :  { %v190_v51 = vpop.f32.mrb[13].mxu1 }
 0x1f5   :  { %v1194_v42 = vpop.permute.xlu1 %1193 }
 0x23e   :  { %v2644_v38 = vpop.f32.mrb[14].mxu1 }
 0x23f   :  { %v2646_v28 = vpop.f32.mrb[15].mxu1 }
 0x242   :  { %v2648_v60 = vpop.f32.mrb[16].mxu1 }
 0x243   :  { %v2650_v17 = vpop.f32.mrb[17].mxu1 }
 0x246   :  { %v2652_v39 = vpop.f32.mrb[18].mxu1 }
 0x247   :  { %v2654_v35 = vpop.f32.mrb[19].mxu1 }
 0x24a   :  { %v2656_v27 = vpop.f32.mrb[20].mxu1 }
 0x24b   :  { %v2658_v26 = vpop.f32.mrb[21].mxu1 }
 0x266   :  { %v1110_v0 = vpop.f32.mrb[0].mxu0 }
 0x267   :  { %v1784_v36 = vadd.f32 %v1110_v0, %v170_v18  ;;  %v1112_v15 = vpop.f32.mrb[1].mxu0  ;;  %v870_v18 = vld [vmem:[%s2749_s3 + $0x28] sm:$0xff] }
 0x268   :  { %v1785_v52 = vadd.f32 %v1112_v15, %v172_v10  ;;  %1728 = vmatmul.mubr.msk.f32.gmra.mrb[10].mxu0 %vm1019_vm8, %v870_v18  ;;  %v871_v10 = vld [vmem:[%s2749_s3 + $0x30] sm:$0xff] }
 0x269   :  { %v1165_v33 = vmax.f32 %v1784_v36, 0.0  ;;  %1144 = vmatprep.mubr.f32.mxu0 %v1910_v2 }
 0x26a   :  { %v1116_v5 = vpop.f32.mrb[2].mxu0  ;;  %v1166_v19 = vmax.f32 %v1785_v52, 0.0  ;;  %v1199_v52 = vpop.permute.xlu1 %1198 }
 0x26b   :  { %v1786_v50 = vadd.f32 %v1116_v5, %v176_v57  ;;  %v1118_v47 = vpop.f32.mrb[3].mxu0  ;;  %v872_v57 = vld [vmem:[%s2749_s3 + $0x38] sm:$0xff] }
 0x26c   :  { %v1787_v3 = vadd.f32 %v1118_v47, %v178_v6  ;;  %1729 = vmatmul.mubr.msk.f32.gmra.mrb[12].mxu0 %vm1019_vm8, %v871_v10  ;;  %v1184_v6 = vpop.permute.xlu0 %1183 }
 0x26d   :  { %v1167_v23 = vmax.f32 %v1786_v50, 0.0  ;;  %1150 = vmatprep.mubr.f32.mxu0 %v1910_v2 }
 0x26e   :  { %v1168_v44 = vmax.f32 %v1787_v3, 0.0  ;;  %v1122_v59 = vpop.f32.mrb[4].mxu0 }
 0x26f   :  { %v1754_v25 = vpack.c.bf16 %v1167_v23, %v1165_v33  ;;  %v1788_v31 = vadd.f32 %v1122_v59, %v182_v61  ;;  %v1124_v8 = vpop.f32.mrb[5].mxu0 }
 0x270   :  { %v1752_v34 = vpack.c.bf16 %v1168_v44, %v1166_v19  ;;  %v1789_v32 = vadd.f32 %v1124_v8, %v184_v45  ;;  %1730 = vmatmul.mubr.msk.f32.gmra.mrb[14].mxu0 %vm1019_vm8, %v872_v57  ;;  %v1313_v8 = vld [vmem:[%s2751_s5 + $0x30] sm:$0xff] }
 0x271   :  { %v1169_v58 = vmax.f32 %v1788_v31, 0.0  ;;  %1391 = vmatprep.mubr.f32.mxu0 %v1910_v2  ;;  %v1312_v31 = vld [vmem:[%s2751_s5 + $0x28] sm:$0xff] }
 0x272   :  { %v1128_v46 = vpop.f32.mrb[6].mxu0  ;;  %1753 = vmatprep.subr.bf16.mxu1 %v1752_v34  ;;  %v1170_v41 = vmax.f32 %v1789_v32, 0.0  ;;  %v1314_v34 = vld [vmem:[%s2751_s5 + $0x38] sm:$0xff] }
 0x273   :  { %v1790_v21 = vadd.f32 %v1128_v46, %v188_v1  ;;  %v1130_v4 = vpop.f32.mrb[7].mxu0  ;;  %1755 = vmatpush1.bf16.msra.mxu1 %v1754_v25  ;;  %v1189_v1 = vpop.permute.xlu0 %1188  ;;  %v1311_v25 = vld [vmem:[%s2751_s5 + $0x20] sm:$0xff] }
 0x274   :  { %v1791_v20 = vadd.f32 %v1130_v4, %v190_v51 }
 0x275   :  { %v1171_v30 = vmax.f32 %v1790_v21, 0.0 }
 0x276   :  { %v1172_v7 = vmax.f32 %v1791_v20, 0.0 }
 0x277   :  { %v1758_v56 = vpack.c.bf16 %v1171_v30, %v1169_v58 }
 0x278   :  { %v1756_v48 = vpack.c.bf16 %v1172_v7, %v1170_v41 }
 0x27a   :  { %1757 = vmatprep.subr.bf16.mxu1 %v1756_v48 }
 0x27b   :  { %1759 = vmatpush1.bf16.msra.mxu1 %v1758_v56 }
 0x27e   :  { %1731 = vmatmul.mubr.msk.f32.vlgmr.msra.gmra.mrb[22].mxu1 %vm1201_vm1, %v1173_v22 }
 0x27f   :  { %1284 = vmatprep.mubr.f32.mxu1 %v1910_v2 }
 0x282   :  { %1732 = vmatmul.mubr.msk.f32.gmra.mrb[24].mxu1 %vm1201_vm1, %v1174_v43 }
 0x283   :  { %1290 = vmatprep.mubr.f32.mxu1 %v1910_v2 }
 0x286   :  { %1733 = vmatmul.mubr.msk.f32.gmra.mrb[26].mxu1 %vm1201_vm1, %v1175_v62 }
 0x287   :  { %1296 = vmatprep.mubr.f32.mxu1 %v1910_v2 }
 0x28a   :  { %1734 = vmatmul.mubr.msk.f32.gmra.mrb[28].mxu1 %vm1201_vm1, %v1176_v55 }
 0x28b   :  { %1536 = vmatprep.mubr.f32.mxu1 %v1910_v2 }
 0x351   :  { %v1280_v61 = vpop.f32.mrb[22].mxu1 }
 0x352   :  { %v1282_v9 = vpop.f32.mrb[23].mxu1  ;;  %v1281_v45 = vadd.f32 %v1280_v61, %v1184_v6 }
 0x353   :  { %v1283_v63 = vadd.f32 %v1282_v9, %v1184_v6 }
 0x354   :  { %v1303_v11 = vmax.f32 %v1281_v45, 0.0 }
 0x355   :  { %v1286_v51 = vpop.f32.mrb[24].mxu1  ;;  %v1304_v37 = vmax.f32 %v1283_v63, 0.0 }
 0x356   :  { %v1287_v54 = vadd.f32 %v1286_v51, %v1189_v1  ;;  %v1288_v12 = vpop.f32.mrb[25].mxu1 }
 0x357   :  { %v1289_v24 = vadd.f32 %v1288_v12, %v1189_v1 }
 0x358   :  { %v1305_v40 = vmax.f32 %v1287_v54, 0.0  ;;  %v1443_v54 = vpop.permute.xlu0 %1442 }
 0x359   :  { %v1306_v53 = vmax.f32 %v1289_v24, 0.0  ;;  %v1292_v13 = vpop.f32.mrb[26].mxu1 }
 0x35a   :  { %v1762_v14 = vpack.c.bf16 %v1305_v40, %v1303_v11  ;;  %v1294_v29 = vpop.f32.mrb[27].mxu1  ;;  %v1293_v0 = vadd.f32 %v1292_v13, %v1194_v42 }
 0x35b   :  { %v1760_v49 = vpack.c.bf16 %v1306_v53, %v1304_v37  ;;  %v1295_v36 = vadd.f32 %v1294_v29, %v1194_v42  ;;  %v1448_v42 = vpop.permute.xlu1 %1447 }
 0x35c   :  { %v1307_v3 = vmax.f32 %v1293_v0, 0.0 }
 0x35d   :  { %v1298_v15 = vpop.f32.mrb[28].mxu1  ;;  %1761 = vmatprep.subr.bf16.mxu0 %v1760_v49  ;;  %v1308_v23 = vmax.f32 %v1295_v36, 0.0 }
 0x35e   :  { %v1299_v5 = vadd.f32 %v1298_v15, %v1199_v52  ;;  %v1300_v50 = vpop.f32.mrb[29].mxu1  ;;  %1763 = vmatpush1.bf16.msra.mxu0 %v1762_v14 }
 0x35f   :  { %v1301_v47 = vadd.f32 %v1300_v50, %v1199_v52  ;;  %v1453_v52 = vpop.permute.xlu0 %1452  ;;  %v1458_v50 = vpop.permute.xlu1 %1457 }
 0x360   :  { %v1309_v33 = vmax.f32 %v1299_v5, 0.0 }
 0x361   :  { %v1310_v19 = vmax.f32 %v1301_v47, 0.0 }
 0x362   :  { %v1766_v44 = vpack.c.bf16 %v1309_v33, %v1307_v3 }
 0x363   :  { %v1764_v59 = vpack.c.bf16 %v1310_v19, %v1308_v23 }
 0x365   :  { %1765 = vmatprep.subr.bf16.mxu0 %v1764_v59 }
 0x366   :  { %1767 = vmatpush1.bf16.msra.mxu0 %v1766_v44 }
 0x369   :  { %1735 = vmatmul.mubr.msk.f32.vlgmr.msra.gmra.mrb[8].mxu0 %vm1201_vm1, %v1311_v25 }
 0x36a   :  { %1397 = vmatprep.mubr.f32.mxu0 %v1910_v2 }
 0x36d   :  { %1736 = vmatmul.mubr.msk.f32.gmra.mrb[10].mxu0 %vm1201_vm1, %v1312_v31 }
 0x36e   :  { %1403 = vmatprep.mubr.f32.mxu0 %v1910_v2 }
 0x371   :  { %1737 = vmatmul.mubr.msk.f32.gmra.mrb[12].mxu0 %vm1201_vm1, %v1313_v8 }
 0x372   :  { %1409 = vmatprep.mubr.f32.mxu0 %v1910_v2 }
 0x375   :  { %1738 = vmatmul.mubr.msk.f32.gmra.mrb[14].mxu0 %vm1201_vm1, %v1314_v34 }
 0x43c   :  { %v1393_v32 = vpop.f32.mrb[8].mxu0 }
 0x43d   :  { %v1792_v46 = vadd.f32 %v1393_v32, %v2644_v38  ;;  %v1395_v21 = vpop.f32.mrb[9].mxu0  ;;  %v1569_v32 = vld [vmem:[%s2753_s7] sm:$0x7] }
 0x43e   :  { %v1793_v4 = vadd.f32 %v1395_v21, %v2646_v28 }
 0x43f   :  { %v1424_v7 = vmax.f32 %v1792_v46, 0.0  ;;  %v1574_v46 = vpop.permute.xlu0 %1573 }
 0x440   :  { %v1399_v20 = vpop.f32.mrb[10].mxu0  ;;  %v1425_v48 = vmax.f32 %v1793_v4, 0.0 }
 0x441   :  { %v1794_v58 = vadd.f32 %v1399_v20, %v2648_v60  ;;  %v1401_v30 = vpop.f32.mrb[11].mxu0 }
 0x442   :  { %v1795_v41 = vadd.f32 %v1401_v30, %v2650_v17 }
 0x443   :  { %v1426_v56 = vmax.f32 %v1794_v58, 0.0 }
 0x444   :  { %v1427_v22 = vmax.f32 %v1795_v41, 0.0  ;;  %v1405_v43 = vpop.f32.mrb[12].mxu0  ;;  %v1885_v41 = vld [vmem:[%s2746_s0] sm:$0xff] }
 0x445   :  { %v1770_v62 = vpack.c.bf16 %v1426_v56, %v1424_v7  ;;  %v1796_v55 = vadd.f32 %v1405_v43, %v2652_v39  ;;  %v1407_v16 = vpop.f32.mrb[13].mxu0  ;;  %v1432_v39 = vld [vmem:[%s2751_s5 + $0x40] sm:$0xff] }
 0x446   :  { %v1768_v18 = vpack.c.bf16 %v1427_v22, %v1425_v48  ;;  %v1797_v38 = vadd.f32 %v1407_v16, %v2654_v35  ;;  %v1433_v35 = vld [vmem:[%s2751_s5 + $0x48] sm:$0xff] }
 0x447   :  { %v1428_v57 = vmax.f32 %v1796_v55, 0.0 }
 0x448   :  { %v1411_v10 = vpop.f32.mrb[14].mxu0  ;;  %1769 = vmatprep.subr.bf16.mxu1 %v1768_v18  ;;  %v1429_v61 = vmax.f32 %v1797_v38, 0.0 }
 0x449   :  { %v1798_v28 = vadd.f32 %v1411_v10, %v2656_v27  ;;  %v1413_v60 = vpop.f32.mrb[15].mxu0  ;;  %1771 = vmatpush1.bf16.msra.mxu1 %v1770_v62  ;;  %v1434_v27 = vld [vmem:[%s2751_s5 + $0x50] sm:$0xff] }
 0x44a   :  { %v1799_v17 = vadd.f32 %v1413_v60, %v2658_v26  ;;  %v1435_v26 = vld [vmem:[%s2751_s5 + $0x58] sm:$0xff] }
 0x44b   :  { %v1430_v6 = vmax.f32 %v1798_v28, 0.0 }
 0x44c   :  { %v1431_v9 = vmax.f32 %v1799_v17, 0.0 }
 0x44d   :  { %v1774_v45 = vpack.c.bf16 %v1430_v6, %v1428_v57 }
 0x44e   :  { %v1772_v1 = vpack.c.bf16 %v1431_v9, %v1429_v61 }
 0x450   :  { %1773 = vmatprep.subr.bf16.mxu1 %v1772_v1 }
 0x451   :  { %1775 = vmatpush1.bf16.msra.mxu1 %v1774_v45 }
 0x454   :  { %1739 = vmatmul.mubr.msk.f32.vlgmr.msra.gmra.mrb[30].mxu1 %vm1201_vm1, %v1432_v39 }
 0x455   :  { %1542 = vmatprep.mubr.f32.mxu1 %v1910_v2 }
 0x458   :  { %1740 = vmatmul.mubr.msk.f32.gmra.mrb[32].mxu1 %vm1201_vm1, %v1433_v35 }
 0x459   :  { %1548 = vmatprep.mubr.f32.mxu1 %v1910_v2 }
 0x45c   :  { %1741 = vmatmul.mubr.msk.f32.gmra.mrb[34].mxu1 %vm1201_vm1, %v1434_v27 }
 0x45d   :  { %1554 = vmatprep.mubr.f32.mxu1 %v1910_v2 }
 0x460   :  { %1742 = vmatmul.mubr.msk.f32.gmra.mrb[36].mxu1 %vm1201_vm1, %v1435_v26 }
 0x461   :  { %1643 = vmatprep.mubr.f32.mxu1 %v1910_v2 }
 0x527   :  { %v1538_v63 = vpop.f32.mrb[30].mxu1 }
 0x528   :  { %v1540_v51 = vpop.f32.mrb[31].mxu1  ;;  %v1539_v12 = vadd.f32 %v1538_v63, %v1443_v54 }
 0x529   :  { %v1541_v24 = vadd.f32 %v1540_v51, %v1443_v54 }
 0x52a   :  { %v1561_v13 = vmax.f32 %v1539_v12, 0.0 }
 0x52b   :  { %v1544_v11 = vpop.f32.mrb[32].mxu1  ;;  %v1562_v29 = vmax.f32 %v1541_v24, 0.0 }
 0x52c   :  { %v1545_v40 = vadd.f32 %v1544_v11, %v1448_v42  ;;  %v1546_v37 = vpop.f32.mrb[33].mxu1 }
 0x52d   :  { %v1547_v53 = vadd.f32 %v1546_v37, %v1448_v42 }
 0x52e   :  { %v1563_v14 = vmax.f32 %v1545_v40, 0.0 }
 0x52f   :  { %v1564_v49 = vmax.f32 %v1547_v53, 0.0  ;;  %v1550_v0 = vpop.f32.mrb[34].mxu1 }
 0x530   :  { %v1778_v36 = vpack.c.bf16 %v1563_v14, %v1561_v13  ;;  %v1552_v15 = vpop.f32.mrb[35].mxu1  ;;  %v1551_v2 = vadd.f32 %v1550_v0, %v1453_v52 }
 0x531   :  { %v1776_v5 = vpack.c.bf16 %v1564_v49, %v1562_v29  ;;  %v1553_v47 = vadd.f32 %v1552_v15, %v1453_v52 }
 0x532   :  { %v1565_v44 = vmax.f32 %v1551_v2, 0.0 }
 0x533   :  { %v1556_v3 = vpop.f32.mrb[36].mxu1  ;;  %1777 = vmatprep.subr.bf16.mxu1 %v1776_v5  ;;  %v1566_v25 = vmax.f32 %v1553_v47, 0.0 }
 0x534   :  { %v1557_v33 = vadd.f32 %v1556_v3, %v1458_v50  ;;  %v1558_v23 = vpop.f32.mrb[37].mxu1  ;;  %1779 = vmatpush1.bf16.msra.mxu1 %v1778_v36 }
 0x535   :  { %v1559_v19 = vadd.f32 %v1558_v23, %v1458_v50 }
 0x536   :  { %v1567_v59 = vmax.f32 %v1557_v33, 0.0 }
 0x537   :  { %v1568_v31 = vmax.f32 %v1559_v19, 0.0 }
 0x538   :  { %v1782_v8 = vpack.c.bf16 %v1567_v59, %v1565_v44 }
 0x539   :  { %v1780_v34 = vpack.c.bf16 %v1568_v31, %v1566_v25 }
 0x53b   :  { %1781 = vmatprep.subr.bf16.mxu1 %v1780_v34 }
 0x53c   :  { %1783 = vmatpush1.bf16.msra.mxu1 %v1782_v8 }
 0x53f   :  { %1743 = vmatmul.mubr.msk.f32.vlgmr.msra.gmra.mrb[38].mxu1 %vm1201_vm1, %v1569_v32 }
 0x612   :  { %v1645_v21 = vpop.f32.mrb[38].mxu1 }
 0x613   :  { %v1646_v4 = vadd.f32 %v1645_v21, %v1574_v46  ;;  %v1647_v20 = vpop.f32.mrb[39].mxu1 }
 0x614   :  { %v1648_v58 = vadd.f32 %v1647_v20, %v1574_v46 }
 0x616   :  { %v1652_v30 = vcombine.low %v1646_v4, %v1648_v58 }
 0x618   :  { %v1654_v7 = vadd.f32 %v1885_v41, %v1652_v30 }
 0x61a   :  { %1655 = vst [vmem:[#allocation2] sm:$0x77] %v1654_v7 }
 0x61b   :  { %1897 = shalt.err (!%p1894_p4)
}
 0x61c   :  { %s1898_s18 = scalar_lea.hbm %s2755_s9, 128 }
 0x61d   :  { %p1899_p5 = scmp.ne.s32.totalorder %s2755_s9, %s1898_s18  ;;  %p1902_p6 = scmp.lt.u32.totalorder %s1898_s18, %s2755_s9 }
 0x61f   :  { %p1904_p7 = pnand %p1902_p6, %p1899_p5 }
 0x621   :  { %1907 = shalt.err (!%p1904_p7)
}
 0x622   :  { %1665 = dma.vmem_to_hbm [thread:$0]  %s1663_s13, 128, %s2755_s9, [#allocation3]  }
 0x623   :  { %1908 = dma.done.wait [#allocation3], 128  }
 0x624   :  { %1909 = vsyncadd [#allocation3], 4294967168 }
 0x625   :  { %1669 = vsyncpa [#allocation3], 1 }

</bundles_post_ra>
